<compile_context>
chip_gen: v5e
topology: v5e:2x2
jax: 0.10.0
libtpu: 0.0.40
codegen_flags: <defaults>
</compile_context>

<pallas_src>
import numpy as np
import jax
import jax.numpy as jnp
from jax.experimental import pallas as pl
from jax.experimental.pallas import tpu as pltpu

# ---------------- small config (consistent with module defaults, scaled down) ----------------
B = 4          # batched encoder instances per pallas_call
N = 8          # number of instances (tokens)
HID = 32       # hidden_size            -> x has 2*HID features
H2 = 2 * HID   # 64
H4 = 4 * HID   # 128
REP = 64       # representation_size
NH = 8         # num_heads
SUB = REP // NH  # 8
NL = 2         # num_layers
EPS = 1e-5

# ---------------- packed-slab layout (per layer) ----------------------------------------------
WROWS = 400            # per-layer weight-slab rows (392 used + 8 pad; multiple of 16 for bf16)
R_WU = 0               # Wu.T   [0:64,   0:64]   | Wp.T   [0:64,   64:128]
R_WM = 64              # wm_bd  [64:128, 0:64]   | Wagg.T [64:128, 64:128]
R_WF1 = 128            # Wf1.T  [128:192, 0:128]
R_WF2 = 192            # Wf2.T  [192:320, 0:64]
R_WA = 320             # wa_i   [320:384, 0:8]   | wa3    [320:384, 8:16]
R_E = 384              # E      [384:392, 0:64]
VROWS = 8              # per-layer bias/LN-slab rows (6 used + 2 pad; f32 tile = 8)
# V rows: 0: bu|bp   1: bm|bagg   2: g1|be1   3: g2|be2   4: bf1   5: bf2


# ---------------------------------- Pallas kernel ---------------------------------------------
def _layernorm(v, g, b):
    mu = jnp.mean(v, axis=-1, keepdims=True)
    var = jnp.mean((v - mu) ** 2, axis=-1, keepdims=True)
    return (v - mu) * jax.lax.rsqrt(var + EPS) * g + b


def encoder_kernel(x_ref, y_ref, w_ref, v_ref, o_ref):
    """One grid step == one full encoder instance (all NL layers, unrolled)."""
    n = x_ref.shape[0]
    f32, bf16 = jnp.float32, jnp.bfloat16

    x = x_ref[...]                              # (n, 2h) f32, carried as a local value
    y = y_ref[...].astype(bf16)                 # (n*n, rep), row a*n+b == pair (i=a, j=b)

    # Fully-unrolled layer loop (NL static & tiny): all slab offsets are compile-time constants.
    for l in range(NL):
        wb = l * WROWS
        vb = l * VROWS

        # ---- static slices of the packed weight slab (bf16) ----
        wu   = w_ref[wb + R_WU:  wb + R_WU + H2,  0:REP]
        wp   = w_ref[wb + R_WU:  wb + R_WU + REP, 64:64 + REP]
        wm   = w_ref[wb + R_WM:  wb + R_WM + REP, 0:REP]         # block-diag per-head message
        wagg = w_ref[wb + R_WM:  wb + R_WM + REP, 64:64 + H2]
        wf1  = w_ref[wb + R_WF1: wb + R_WF1 + H2, 0:H4]
        wf2  = w_ref[wb + R_WF2: wb + R_WF2 + H4, 0:H2]
        wai  = w_ref[wb + R_WA:  wb + R_WA + REP, 0:NH]          # attn weight for u_i term
        wa3  = w_ref[wb + R_WA:  wb + R_WA + REP, NH:2 * NH]     # attn weight for p term
        expd = w_ref[wb + R_E:   wb + R_E + NH,   0:REP].astype(f32)   # 0/1 head->feature expander

        # ---- static slices of the packed bias / LayerNorm slab (f32) ----
        bu   = v_ref[vb + 0:vb + 1, 0:REP]
        bp   = v_ref[vb + 0:vb + 1, 64:64 + REP]
        bm   = v_ref[vb + 1:vb + 2, 0:REP]
        bagg = v_ref[vb + 1:vb + 2, 64:64 + H2]
        g1   = v_ref[vb + 2:vb + 3, 0:H2]
        be1  = v_ref[vb + 2:vb + 3, 64:64 + H2]
        g2   = v_ref[vb + 3:vb + 4, 0:H2]
        be2  = v_ref[vb + 3:vb + 4, 64:64 + H2]
        bf1  = v_ref[vb + 4:vb + 5, 0:H4]
        bf2  = v_ref[vb + 5:vb + 6, 0:H2]

        # ---- unary / pairwise projections (ReLU in f32) ----
        u = jnp.maximum(jnp.dot(x.astype(bf16), wu, preferred_element_type=f32) + bu, 0.0)  # (n, rep)
        p = jnp.maximum(jnp.dot(y, wp, preferred_element_type=f32) + bp, 0.0)               # (n*n, rep)

        # broadcast u over j: row a*n+b of u_rep is u[a] (needed for both messages and logits)
        u_rep = jnp.broadcast_to(u[:, None, :], (n, n, REP)).reshape(n * n, REP)
        ub_rep = u_rep.astype(bf16)
        pb = p.astype(bf16)

        # ---- attention logits kept in the i-major (n*n, NH) layout.
        # The u_j term and the bias are constant along the softmax axis (i) and cancel -> omitted.
        logits = (jnp.dot(ub_rep, wai, preferred_element_type=f32)
                  + jnp.dot(pb, wa3, preferred_element_type=f32))                   # (n*n, NH)
        lg = logits.reshape(n, n, NH)                                               # [i, j, h]
        lg = lg - jnp.max(lg, axis=0, keepdims=True)
        ew = jnp.exp(lg)
        w = (ew / jnp.sum(ew, axis=0, keepdims=True)).reshape(n * n, NH)            # softmax over i

        # ---- per-head messages through the block-diagonal message linears ----
        m = jnp.dot((u_rep * p).astype(bf16), wm, preferred_element_type=f32) + bm  # (n*n, rep)

        # expand per-head attention weights to per-feature (E is 0/1, f32 for parity), sum over i
        w_exp = jnp.dot(w, expd, preferred_element_type=f32)                        # (n*n, rep)
        agg = jnp.maximum(jnp.sum((w_exp * m).reshape(n, n, REP), axis=0), 0.0)     # (n, rep)
        agg = jnp.dot(agg.astype(bf16), wagg, preferred_element_type=f32) + bagg    # (n, 2h)
        # dropout == identity (eval mode)

        x1 = _layernorm(x + agg, g1, be1)

        # FFN: LayerNorm(x1 + W2(relu(W1 x1)))
        h1 = jnp.maximum(jnp.dot(x1.astype(bf16), wf1, preferred_element_type=f32) + bf1, 0.0)
        h2 = jnp.dot(h1.astype(bf16), wf2, preferred_element_type=f32) + bf2
        x = _layernorm(x1 + h2, g2, be2)

    o_ref[...] = x.astype(o_ref.dtype)


@jax.jit
def _encoder_batched(xb, yb, w_slab, v_slab):
    b_sz, n, h2 = xb.shape
    nn = yb.shape[1] * yb.shape[2]
    rep = yb.shape[-1]
    y_flat = yb.reshape(b_sz, nn, rep)
    return pl.pallas_call(
        encoder_kernel,
        out_shape=jax.ShapeDtypeStruct((b_sz, n, h2), xb.dtype),
        grid_spec=pltpu.PrefetchScalarGridSpec(
            num_scalar_prefetch=0,
            grid=(b_sz,),
            in_specs=[
                pl.BlockSpec((None, n, h2), lambda b: (b, 0, 0)),     # per-instance x
                pl.BlockSpec((None, nn, rep), lambda b: (b, 0, 0)),   # per-instance y (flattened)
                pl.BlockSpec((NL * WROWS, 128), lambda b: (0, 0)),    # all-layer weight slab (resident)
                pl.BlockSpec((NL * VROWS, 128), lambda b: (0, 0)),    # all-layer bias/LN slab (resident)
            ],
            out_specs=pl.BlockSpec((None, n, h2), lambda b: (b, 0, 0)),
        ),
        compiler_params=pltpu.CompilerParams(dimension_semantics=("parallel",)),
    )(xb, y_flat, w_slab, v_slab)


def modified_encoder(x, y, w_slab, v_slab):
    """Pallas-backed ModifiedEncoder.forward.

    Accepts a single instance (n, 2h)/(n, n, rep) or a batch (B, n, 2h)/(B, n, n, rep).
    Returns (x, attn_weights) with attn=None per layer (return_weights=False).
    """
    single = x.ndim == 2
    if single:
        x, y = x[None], y[None]
    out = _encoder_batched(x, y, w_slab, v_slab)
    if single:
        out = out[0]
    return out, [None] * NL


# ---------------------------- parameter init / host-side packing ----------------------------
def init_layer_params(key):
    ks = jax.random.split(key, 14)

    def lin(k, out_dim, in_dim):
        kw, kb = jax.random.split(k)
        W = jax.random.normal(kw, (out_dim, in_dim), jnp.float32) / jnp.sqrt(in_dim)
        b = 0.01 * jax.random.normal(kb, (out_dim,), jnp.float32)
        return W, b

    Wu, bu = lin(ks[0], REP, H2)
    Wp, bp = lin(ks[1], REP, REP)
    Wa = jax.random.normal(ks[2], (NH, 3 * SUB), jnp.float32) / jnp.sqrt(3 * SUB)
    ba = 0.01 * jax.random.normal(ks[3], (NH,), jnp.float32)
    Wm = jax.random.normal(ks[4], (NH, SUB, SUB), jnp.float32) / jnp.sqrt(SUB)
    bm = 0.01 * jax.random.normal(ks[5], (NH, SUB), jnp.float32)
    Wagg, bagg = lin(ks[6], H2, REP)
    g1 = 1.0 + 0.1 * jax.random.normal(ks[7], (H2,), jnp.float32)
    be1 = 0.1 * jax.random.normal(ks[8], (H2,), jnp.float32)
    Wf1, bf1 = lin(ks[9], H4, H2)
    Wf2, bf2 = lin(ks[10], H2, H4)
    g2 = 1.0 + 0.1 * jax.random.normal(ks[11], (H2,), jnp.float32)
    be2 = 0.1 * jax.random.normal(ks[12], (H2,), jnp.float32)
    return dict(Wu=Wu, bu=bu, Wp=Wp, bp=bp, Wa=Wa, ba=ba, Wm=Wm, bm=bm,
                Wagg=Wagg, bagg=bagg, g1=g1, be1=be1,
                Wf1=Wf1, bf1=bf1, Wf2=Wf2, bf2=bf2, g2=g2, be2=be2)


def pack_params(layer_params):
    """One-time host-side (numpy) packing of torch-convention weights into two 2-D slabs."""
    nl = len(layer_params)
    W = np.zeros((nl * WROWS, 128), np.float32)
    V = np.zeros((nl * VROWS, 128), np.float32)
    for l, P in enumerate(layer_params):
        Pn = {k: np.asarray(v) for k, v in P.items()}
        wb, vb = l * WROWS, l * VROWS
        # projections (pre-transposed)
        W[wb + R_WU:wb + R_WU + H2, 0:REP] = Pn['Wu'].T
        W[wb + R_WU:wb + R_WU + REP, 64:64 + REP] = Pn['Wp'].T
        # block-diagonal per-head message linears
        wm_bd = np.zeros((REP, REP), np.float32)
        for h in range(NH):
            wm_bd[h * SUB:(h + 1) * SUB, h * SUB:(h + 1) * SUB] = Pn['Wm'][h].T
        W[wb + R_WM:wb + R_WM + REP, 0:REP] = wm_bd
        W[wb + R_WM:wb + R_WM + REP, 64:64 + H2] = Pn['Wagg'].T
        # FFN
        W[wb + R_WF1:wb + R_WF1 + H2, 0:H4] = Pn['Wf1'].T
        W[wb + R_WF2:wb + R_WF2 + H4, 0:H2] = Pn['Wf2'].T
        # attention: column h of wa_i holds Wa[h,:S] in head-h rows (u_i term); wa3 column h holds
        # Wa[h,2S:] (p term).  The u_j columns Wa[h,S:2S] and bias ba cancel in the softmax over
        # dim 0 and are not packed (return_weights=False).
        for h in range(NH):
            rows = slice(wb + R_WA + h * SUB, wb + R_WA + (h + 1) * SUB)
            W[rows, h] = Pn['Wa'][h, :SUB]
            W[rows, NH + h] = Pn['Wa'][h, 2 * SUB:]
        # expander E (NH, REP): head h -> ones over its SUB feature block
        W[wb + R_E:wb + R_E + NH, 0:REP] = np.kron(np.eye(NH, dtype=np.float32),
                                                   np.ones((1, SUB), np.float32))
        # biases / LayerNorm params
        V[vb + 0, 0:REP] = Pn['bu'];               V[vb + 0, 64:64 + REP] = Pn['bp']
        V[vb + 1, 0:REP] = Pn['bm'].reshape(-1);   V[vb + 1, 64:64 + H2] = Pn['bagg']
        V[vb + 2, 0:H2] = Pn['g1'];                V[vb + 2, 64:64 + H2] = Pn['be1']
        V[vb + 3, 0:H2] = Pn['g2'];                V[vb + 3, 64:64 + H2] = Pn['be2']
        V[vb + 4, 0:H4] = Pn['bf1']
        V[vb + 5, 0:H2] = Pn['bf2']
    return jnp.asarray(W, jnp.bfloat16), jnp.asarray(V, jnp.float32)


# ------------------------------- pure-JAX reference (torch-faithful) -------------------------
def _layernorm_ref(v, g, b):
    mu = jnp.mean(v, axis=-1, keepdims=True)
    var = jnp.mean((v - mu) ** 2, axis=-1, keepdims=True)
    return (v - mu) / jnp.sqrt(var + EPS) * g + b


def layer_ref(x, y, P):
    n = x.shape[0]
    u = jax.nn.relu(x @ P['Wu'].T + P['bu'])                       # (n, rep)
    p = jax.nn.relu(y @ P['Wp'].T + P['bp'])                       # (n, n, rep)
    u_r = u.reshape(n, NH, SUB).transpose(1, 0, 2)                 # (H, n, sub)
    p_r = p.reshape(n, n, NH, SUB).transpose(2, 0, 1, 3)           # (H, n, n, sub)
    head_outs = []
    for h in range(NH):
        uh, ph = u_r[h], p_r[h]
        ui = jnp.broadcast_to(uh[:, None, :], (n, n, SUB))         # u_r[:, i]
        uj = jnp.broadcast_to(uh[None, :, :], (n, n, SUB))         # u_r[:, j]
        f = jnp.concatenate([ui, uj, ph], axis=-1)
        logit = jnp.einsum('abk,k->ab', f, P['Wa'][h]) + P['ba'][h]
        w = jax.nn.softmax(logit, axis=0)[..., None]               # softmax over dim 0
        msg = (ui * ph) @ P['Wm'][h].T + P['bm'][h]
        head_outs.append(jnp.sum(w * msg, axis=0))                 # (n, sub)
    agg = jax.nn.relu(jnp.concatenate(head_outs, axis=-1)) @ P['Wagg'].T + P['bagg']
    x1 = _layernorm_ref(x + agg, P['g1'], P['be1'])
    h1 = jax.nn.relu(x1 @ P['Wf1'].T + P['bf1'])
    h2 = h1 @ P['Wf2'].T + P['bf2']
    return _layernorm_ref(x1 + h2, P['g2'], P['be2'])


def modified_encoder_ref(x, y, layer_params):
    for P in layer_params:
        x = layer_ref(x, y, P)
    return x


# --------------------------------------------- main -----------------------------------------
if __name__ == "__main__":
    key = jax.random.PRNGKey(0)
    kx, ky, kp = jax.random.split(key, 3)
    x = jax.random.normal(kx, (B, N, H2), jnp.float32)
    y = jax.random.normal(ky, (B, N, N, REP), jnp.float32)
    layer_params = [init_layer_params(k) for k in jax.random.split(kp, NL)]

    # host-side packing done ONCE at init (hoisted out of the forward path)
    w_slab, v_slab = pack_params(layer_params)

    out, attn = modified_encoder(x, y, w_slab, v_slab)
    out = jax.block_until_ready(out)
    assert out.shape == (B, N, H2)

    for b in range(B):
        ref = modified_encoder_ref(x[b], y[b], layer_params)
        err = float(jnp.max(jnp.abs(out[b] - ref)))
        assert jnp.allclose(out[b], ref, atol=5e-2, rtol=5e-2), f"batch {b}: max abs err {err}"
    print("KERNEL_OK")
</pallas_src>

<mosaic_0001>
module attributes {stable_mosaic.version = 11 : i64} {
  func.func @encoder_kernel(%arg0: i32, %arg1: memref<1x8x64xf32, #tpu.memory_space<vmem>>, %arg2: memref<1x64x64xf32, #tpu.memory_space<vmem>>, %arg3: memref<800x128xbf16, #tpu.memory_space<vmem>>, %arg4: memref<16x128xf32, #tpu.memory_space<vmem>>, %arg5: memref<1x8x64xf32, #tpu.memory_space<vmem>>) attributes {dimension_semantics = [#tpu.dimension_semantics<parallel>], iteration_bounds = array<i64: 4>, scalar_prefetch = 0 : i64, scratch_operands = 0 : i64, tpu.core_type = #tpu.core_type<tc>, window_params = [{transform_indices = @transform_0, window_bounds = array<i64: 1, 8, 64>}, {transform_indices = @transform_1, window_bounds = array<i64: 1, 64, 64>}, {pipeline_mode = #tpu.pipeline_mode<synchronous>, transform_indices = @transform_2, window_bounds = array<i64: 800, 128>}, {pipeline_mode = #tpu.pipeline_mode<synchronous>, transform_indices = @transform_3, window_bounds = array<i64: 16, 128>}, {transform_indices = @transform_4, window_bounds = array<i64: 1, 8, 64>}]} {
    %c0 = arith.constant 0 : index
    %c0_0 = arith.constant 0 : index
    %c0_1 = arith.constant 0 : index
    %0 = vector.load %arg1[%c0, %c0_0, %c0_1] : memref<1x8x64xf32, #tpu.memory_space<vmem>>, vector<1x8x64xf32>
    %1 = vector.shape_cast %0 : vector<1x8x64xf32> to vector<8x64xf32>
    %c0_2 = arith.constant 0 : index
    %c0_3 = arith.constant 0 : index
    %c0_4 = arith.constant 0 : index
    %2 = vector.load %arg2[%c0_2, %c0_3, %c0_4] : memref<1x64x64xf32, #tpu.memory_space<vmem>>, vector<1x64x64xf32>
    %3 = vector.shape_cast %2 : vector<1x64x64xf32> to vector<64x64xf32>
    %4 = arith.truncf %3 : vector<64x64xf32> to vector<64x64xbf16>
    %c0_5 = arith.constant 0 : index
    %c0_6 = arith.constant 0 : index
    %5 = vector.load %arg3[%c0_5, %c0_6] : memref<800x128xbf16, #tpu.memory_space<vmem>>, vector<64x64xbf16>
    %c0_7 = arith.constant 0 : index
    %c64 = arith.constant 64 : index
    %6 = vector.load %arg3[%c0_7, %c64] : memref<800x128xbf16, #tpu.memory_space<vmem>>, vector<64x64xbf16>
    %c64_8 = arith.constant 64 : index
    %c0_9 = arith.constant 0 : index
    %7 = vector.load %arg3[%c64_8, %c0_9] : memref<800x128xbf16, #tpu.memory_space<vmem>>, vector<64x64xbf16>
    %c64_10 = arith.constant 64 : index
    %c64_11 = arith.constant 64 : index
    %8 = vector.load %arg3[%c64_10, %c64_11] : memref<800x128xbf16, #tpu.memory_space<vmem>>, vector<64x64xbf16>
    %c128 = arith.constant 128 : index
    %c0_12 = arith.constant 0 : index
    %9 = vector.load %arg3[%c128, %c0_12] : memref<800x128xbf16, #tpu.memory_space<vmem>>, vector<64x128xbf16>
    %c192 = arith.constant 192 : index
    %c0_13 = arith.constant 0 : index
    %10 = vector.load %arg3[%c192, %c0_13] : memref<800x128xbf16, #tpu.memory_space<vmem>>, vector<128x64xbf16>
    %c320 = arith.constant 320 : index
    %c0_14 = arith.constant 0 : index
    %11 = vector.load %arg3[%c320, %c0_14] : memref<800x128xbf16, #tpu.memory_space<vmem>>, vector<64x8xbf16>
    %c320_15 = arith.constant 320 : index
    %c8 = arith.constant 8 : index
    %12 = vector.load %arg3[%c320_15, %c8] : memref<800x128xbf16, #tpu.memory_space<vmem>>, vector<64x8xbf16>
    %c384 = arith.constant 384 : index
    %c0_16 = arith.constant 0 : index
    %13 = vector.load %arg3[%c384, %c0_16] : memref<800x128xbf16, #tpu.memory_space<vmem>>, vector<8x64xbf16>
    %14 = arith.extf %13 : vector<8x64xbf16> to vector<8x64xf32>
    %c0_17 = arith.constant 0 : index
    %c0_18 = arith.constant 0 : index
    %15 = vector.load %arg4[%c0_17, %c0_18] : memref<16x128xf32, #tpu.memory_space<vmem>>, vector<1x64xf32>
    %c0_19 = arith.constant 0 : index
    %c64_20 = arith.constant 64 : index
    %16 = vector.load %arg4[%c0_19, %c64_20] : memref<16x128xf32, #tpu.memory_space<vmem>>, vector<1x64xf32>
    %c1 = arith.constant 1 : index
    %c0_21 = arith.constant 0 : index
    %17 = vector.load %arg4[%c1, %c0_21] : memref<16x128xf32, #tpu.memory_space<vmem>>, vector<1x64xf32>
    %c1_22 = arith.constant 1 : index
    %c64_23 = arith.constant 64 : index
    %18 = vector.load %arg4[%c1_22, %c64_23] : memref<16x128xf32, #tpu.memory_space<vmem>>, vector<1x64xf32>
    %c2 = arith.constant 2 : index
    %c0_24 = arith.constant 0 : index
    %19 = vector.load %arg4[%c2, %c0_24] : memref<16x128xf32, #tpu.memory_space<vmem>>, vector<1x64xf32>
    %c2_25 = arith.constant 2 : index
    %c64_26 = arith.constant 64 : index
    %20 = vector.load %arg4[%c2_25, %c64_26] : memref<16x128xf32, #tpu.memory_space<vmem>>, vector<1x64xf32>
    %c3 = arith.constant 3 : index
    %c0_27 = arith.constant 0 : index
    %21 = vector.load %arg4[%c3, %c0_27] : memref<16x128xf32, #tpu.memory_space<vmem>>, vector<1x64xf32>
    %c3_28 = arith.constant 3 : index
    %c64_29 = arith.constant 64 : index
    %22 = vector.load %arg4[%c3_28, %c64_29] : memref<16x128xf32, #tpu.memory_space<vmem>>, vector<1x64xf32>
    %c4 = arith.constant 4 : index
    %c0_30 = arith.constant 0 : index
    %23 = vector.load %arg4[%c4, %c0_30] : memref<16x128xf32, #tpu.memory_space<vmem>>, vector<1x128xf32>
    %c5 = arith.constant 5 : index
    %c0_31 = arith.constant 0 : index
    %24 = vector.load %arg4[%c5, %c0_31] : memref<16x128xf32, #tpu.memory_space<vmem>>, vector<1x64xf32>
    %25 = arith.truncf %1 : vector<8x64xf32> to vector<8x64xbf16>
    %cst = arith.constant dense<0.000000e+00> : vector<8x64xf32>
    %26 = tpu.matmul %25, %5, %cst {dimension_numbers = #tpu.dot_dimension_numbers<[1], [0], [0], [1], [0, 0, 1, 1], [], []>} : vector<8x64xbf16>, vector<64x64xbf16>, vector<8x64xf32> -> vector<8x64xf32>
    %27 = vector.broadcast %15 : vector<1x64xf32> to vector<8x64xf32>
    %28 = arith.addf %26, %27 : vector<8x64xf32>
    %cst_32 = arith.constant 0.000000e+00 : f32
    %29 = vector.broadcast %cst_32 : f32 to vector<8x64xf32>
    %30 = arith.maximumf %28, %29 : vector<8x64xf32>
    %cst_33 = arith.constant dense<0.000000e+00> : vector<64x64xf32>
    %31 = tpu.matmul %4, %6, %cst_33 {dimension_numbers = #tpu.dot_dimension_numbers<[1], [0], [0], [1], [0, 0, 1, 1], [], []>} : vector<64x64xbf16>, vector<64x64xbf16>, vector<64x64xf32> -> vector<64x64xf32>
    %32 = vector.broadcast %16 : vector<1x64xf32> to vector<64x64xf32>
    %33 = arith.addf %31, %32 : vector<64x64xf32>
    %cst_34 = arith.constant 0.000000e+00 : f32
    %34 = vector.broadcast %cst_34 : f32 to vector<64x64xf32>
    %35 = arith.maximumf %33, %34 : vector<64x64xf32>
    %36 = vector.shape_cast %30 : vector<8x64xf32> to vector<8x1x64xf32>
    %37 = vector.shape_cast %36 : vector<8x1x64xf32> to vector<8x1x64xf32>
    %38 = vector.broadcast %37 : vector<8x1x64xf32> to vector<8x8x64xf32>
    %39 = vector.shape_cast %38 : vector<8x8x64xf32> to vector<64x64xf32>
    %40 = arith.truncf %39 : vector<64x64xf32> to vector<64x64xbf16>
    %41 = arith.truncf %35 : vector<64x64xf32> to vector<64x64xbf16>
    %cst_35 = arith.constant dense<0.000000e+00> : vector<64x8xf32>
    %42 = tpu.matmul %40, %11, %cst_35 {dimension_numbers = #tpu.dot_dimension_numbers<[1], [0], [0], [1], [0, 0, 1, 1], [], []>} : vector<64x64xbf16>, vector<64x8xbf16>, vector<64x8xf32> -> vector<64x8xf32>
    %cst_36 = arith.constant dense<0.000000e+00> : vector<64x8xf32>
    %43 = tpu.matmul %41, %12, %cst_36 {dimension_numbers = #tpu.dot_dimension_numbers<[1], [0], [0], [1], [0, 0, 1, 1], [], []>} : vector<64x64xbf16>, vector<64x8xbf16>, vector<64x8xf32> -> vector<64x8xf32>
    %44 = arith.addf %42, %43 : vector<64x8xf32>
    %45 = vector.shape_cast %44 : vector<64x8xf32> to vector<8x8x8xf32>
    %cst_37 = arith.constant dense<0xFF800000> : vector<8x8xf32>
    %46 = vector.multi_reduction <maximumf>, %45, %cst_37 [0] : vector<8x8x8xf32> to vector<8x8xf32>
    %47 = vector.shape_cast %46 : vector<8x8xf32> to vector<1x8x8xf32>
    %48 = vector.broadcast %47 : vector<1x8x8xf32> to vector<8x8x8xf32>
    %49 = arith.subf %45, %48 : vector<8x8x8xf32>
    %50 = math.exp %49 : vector<8x8x8xf32>
    %cst_38 = arith.constant dense<0.000000e+00> : vector<8x8xf32>
    %51 = vector.multi_reduction <add>, %50, %cst_38 [0] : vector<8x8x8xf32> to vector<8x8xf32>
    %52 = vector.shape_cast %51 : vector<8x8xf32> to vector<1x8x8xf32>
    %53 = vector.broadcast %52 : vector<1x8x8xf32> to vector<8x8x8xf32>
    %54 = arith.divf %50, %53 : vector<8x8x8xf32>
    %55 = vector.shape_cast %54 : vector<8x8x8xf32> to vector<64x8xf32>
    %56 = arith.mulf %39, %35 : vector<64x64xf32>
    %57 = arith.truncf %56 : vector<64x64xf32> to vector<64x64xbf16>
    %cst_39 = arith.constant dense<0.000000e+00> : vector<64x64xf32>
    %58 = tpu.matmul %57, %7, %cst_39 {dimension_numbers = #tpu.dot_dimension_numbers<[1], [0], [0], [1], [0, 0, 1, 1], [], []>} : vector<64x64xbf16>, vector<64x64xbf16>, vector<64x64xf32> -> vector<64x64xf32>
    %59 = vector.broadcast %17 : vector<1x64xf32> to vector<64x64xf32>
    %60 = arith.addf %58, %59 : vector<64x64xf32>
    %cst_40 = arith.constant dense<0.000000e+00> : vector<64x64xf32>
    %61 = tpu.matmul %55, %14, %cst_40 {dimension_numbers = #tpu.dot_dimension_numbers<[1], [0], [0], [1], [0, 0, 1, 1], [], []>} : vector<64x8xf32>, vector<8x64xf32>, vector<64x64xf32> -> vector<64x64xf32>
    %62 = arith.mulf %61, %60 : vector<64x64xf32>
    %63 = vector.shape_cast %62 : vector<64x64xf32> to vector<8x8x64xf32>
    %cst_41 = arith.constant dense<0.000000e+00> : vector<8x64xf32>
    %64 = vector.multi_reduction <add>, %63, %cst_41 [0] : vector<8x8x64xf32> to vector<8x64xf32>
    %cst_42 = arith.constant 0.000000e+00 : f32
    %65 = vector.broadcast %cst_42 : f32 to vector<8x64xf32>
    %66 = arith.maximumf %64, %65 : vector<8x64xf32>
    %67 = arith.truncf %66 : vector<8x64xf32> to vector<8x64xbf16>
    %cst_43 = arith.constant dense<0.000000e+00> : vector<8x64xf32>
    %68 = tpu.matmul %67, %8, %cst_43 {dimension_numbers = #tpu.dot_dimension_numbers<[1], [0], [0], [1], [0, 0, 1, 1], [], []>} : vector<8x64xbf16>, vector<64x64xbf16>, vector<8x64xf32> -> vector<8x64xf32>
    %69 = vector.broadcast %18 : vector<1x64xf32> to vector<8x64xf32>
    %70 = arith.addf %68, %69 : vector<8x64xf32>
    %71 = arith.addf %1, %70 : vector<8x64xf32>
    %cst_44 = arith.constant dense<0.000000e+00> : vector<8xf32>
    %72 = vector.multi_reduction <add>, %71, %cst_44 [1] : vector<8x64xf32> to vector<8xf32>
    %73 = vector.shape_cast %72 : vector<8xf32> to vector<8x1xf32>
    %cst_45 = arith.constant 6.400000e+01 : f32
    %74 = vector.broadcast %cst_45 : f32 to vector<8x1xf32>
    %75 = arith.divf %73, %74 : vector<8x1xf32>
    %76 = vector.broadcast %75 : vector<8x1xf32> to vector<8x64xf32>
    %77 = arith.subf %71, %76 : vector<8x64xf32>
    %78 = arith.mulf %77, %77 : vector<8x64xf32>
    %cst_46 = arith.constant dense<0.000000e+00> : vector<8xf32>
    %79 = vector.multi_reduction <add>, %78, %cst_46 [1] : vector<8x64xf32> to vector<8xf32>
    %80 = vector.shape_cast %79 : vector<8xf32> to vector<8x1xf32>
    %cst_47 = arith.constant 6.400000e+01 : f32
    %81 = vector.broadcast %cst_47 : f32 to vector<8x1xf32>
    %82 = arith.divf %80, %81 : vector<8x1xf32>
    %83 = vector.broadcast %75 : vector<8x1xf32> to vector<8x64xf32>
    %84 = arith.subf %71, %83 : vector<8x64xf32>
    %cst_48 = arith.constant 9.99999974E-6 : f32
    %85 = vector.broadcast %cst_48 : f32 to vector<8x1xf32>
    %86 = arith.addf %82, %85 : vector<8x1xf32>
    %87 = math.rsqrt %86 : vector<8x1xf32>
    %88 = vector.broadcast %87 : vector<8x1xf32> to vector<8x64xf32>
    %89 = arith.mulf %84, %88 : vector<8x64xf32>
    %90 = vector.broadcast %19 : vector<1x64xf32> to vector<8x64xf32>
    %91 = arith.mulf %89, %90 : vector<8x64xf32>
    %92 = vector.broadcast %20 : vector<1x64xf32> to vector<8x64xf32>
    %93 = arith.addf %91, %92 : vector<8x64xf32>
    %94 = arith.truncf %93 : vector<8x64xf32> to vector<8x64xbf16>
    %cst_49 = arith.constant dense<0.000000e+00> : vector<8x128xf32>
    %95 = tpu.matmul %94, %9, %cst_49 {dimension_numbers = #tpu.dot_dimension_numbers<[1], [0], [0], [1], [0, 0, 1, 1], [], []>} : vector<8x64xbf16>, vector<64x128xbf16>, vector<8x128xf32> -> vector<8x128xf32>
    %96 = vector.broadcast %23 : vector<1x128xf32> to vector<8x128xf32>
    %97 = arith.addf %95, %96 : vector<8x128xf32>
    %cst_50 = arith.constant 0.000000e+00 : f32
    %98 = vector.broadcast %cst_50 : f32 to vector<8x128xf32>
    %99 = arith.maximumf %97, %98 : vector<8x128xf32>
    %100 = arith.truncf %99 : vector<8x128xf32> to vector<8x128xbf16>
    %cst_51 = arith.constant dense<0.000000e+00> : vector<8x64xf32>
    %101 = tpu.matmul %100, %10, %cst_51 {dimension_numbers = #tpu.dot_dimension_numbers<[1], [0], [0], [1], [0, 0, 1, 1], [], []>} : vector<8x128xbf16>, vector<128x64xbf16>, vector<8x64xf32> -> vector<8x64xf32>
    %102 = vector.broadcast %24 : vector<1x64xf32> to vector<8x64xf32>
    %103 = arith.addf %101, %102 : vector<8x64xf32>
    %104 = arith.addf %93, %103 : vector<8x64xf32>
    %cst_52 = arith.constant dense<0.000000e+00> : vector<8xf32>
    %105 = vector.multi_reduction <add>, %104, %cst_52 [1] : vector<8x64xf32> to vector<8xf32>
    %106 = vector.shape_cast %105 : vector<8xf32> to vector<8x1xf32>
    %cst_53 = arith.constant 6.400000e+01 : f32
    %107 = vector.broadcast %cst_53 : f32 to vector<8x1xf32>
    %108 = arith.divf %106, %107 : vector<8x1xf32>
    %109 = vector.broadcast %108 : vector<8x1xf32> to vector<8x64xf32>
    %110 = arith.subf %104, %109 : vector<8x64xf32>
    %111 = arith.mulf %110, %110 : vector<8x64xf32>
    %cst_54 = arith.constant dense<0.000000e+00> : vector<8xf32>
    %112 = vector.multi_reduction <add>, %111, %cst_54 [1] : vector<8x64xf32> to vector<8xf32>
    %113 = vector.shape_cast %112 : vector<8xf32> to vector<8x1xf32>
    %cst_55 = arith.constant 6.400000e+01 : f32
    %114 = vector.broadcast %cst_55 : f32 to vector<8x1xf32>
    %115 = arith.divf %113, %114 : vector<8x1xf32>
    %116 = vector.broadcast %108 : vector<8x1xf32> to vector<8x64xf32>
    %117 = arith.subf %104, %116 : vector<8x64xf32>
    %cst_56 = arith.constant 9.99999974E-6 : f32
    %118 = vector.broadcast %cst_56 : f32 to vector<8x1xf32>
    %119 = arith.addf %115, %118 : vector<8x1xf32>
    %120 = math.rsqrt %119 : vector<8x1xf32>
    %121 = vector.broadcast %120 : vector<8x1xf32> to vector<8x64xf32>
    %122 = arith.mulf %117, %121 : vector<8x64xf32>
    %123 = vector.broadcast %21 : vector<1x64xf32> to vector<8x64xf32>
    %124 = arith.mulf %122, %123 : vector<8x64xf32>
    %125 = vector.broadcast %22 : vector<1x64xf32> to vector<8x64xf32>
    %126 = arith.addf %124, %125 : vector<8x64xf32>
    %c400 = arith.constant 400 : index
    %c0_57 = arith.constant 0 : index
    %127 = vector.load %arg3[%c400, %c0_57] : memref<800x128xbf16, #tpu.memory_space<vmem>>, vector<64x64xbf16>
    %c400_58 = arith.constant 400 : index
    %c64_59 = arith.constant 64 : index
    %128 = vector.load %arg3[%c400_58, %c64_59] : memref<800x128xbf16, #tpu.memory_space<vmem>>, vector<64x64xbf16>
    %c464 = arith.constant 464 : index
    %c0_60 = arith.constant 0 : index
    %129 = vector.load %arg3[%c464, %c0_60] : memref<800x128xbf16, #tpu.memory_space<vmem>>, vector<64x64xbf16>
    %c464_61 = arith.constant 464 : index
    %c64_62 = arith.constant 64 : index
    %130 = vector.load %arg3[%c464_61, %c64_62] : memref<800x128xbf16, #tpu.memory_space<vmem>>, vector<64x64xbf16>
    %c528 = arith.constant 528 : index
    %c0_63 = arith.constant 0 : index
    %131 = vector.load %arg3[%c528, %c0_63] : memref<800x128xbf16, #tpu.memory_space<vmem>>, vector<64x128xbf16>
    %c592 = arith.constant 592 : index
    %c0_64 = arith.constant 0 : index
    %132 = vector.load %arg3[%c592, %c0_64] : memref<800x128xbf16, #tpu.memory_space<vmem>>, vector<128x64xbf16>
    %c720 = arith.constant 720 : index
    %c0_65 = arith.constant 0 : index
    %133 = vector.load %arg3[%c720, %c0_65] : memref<800x128xbf16, #tpu.memory_space<vmem>>, vector<64x8xbf16>
    %c720_66 = arith.constant 720 : index
    %c8_67 = arith.constant 8 : index
    %134 = vector.load %arg3[%c720_66, %c8_67] : memref<800x128xbf16, #tpu.memory_space<vmem>>, vector<64x8xbf16>
    %c784 = arith.constant 784 : index
    %c0_68 = arith.constant 0 : index
    %135 = vector.load %arg3[%c784, %c0_68] : memref<800x128xbf16, #tpu.memory_space<vmem>>, vector<8x64xbf16>
    %136 = arith.extf %135 : vector<8x64xbf16> to vector<8x64xf32>
    %c8_69 = arith.constant 8 : index
    %c0_70 = arith.constant 0 : index
    %137 = vector.load %arg4[%c8_69, %c0_70] : memref<16x128xf32, #tpu.memory_space<vmem>>, vector<1x64xf32>
    %c8_71 = arith.constant 8 : index
    %c64_72 = arith.constant 64 : index
    %138 = vector.load %arg4[%c8_71, %c64_72] : memref<16x128xf32, #tpu.memory_space<vmem>>, vector<1x64xf32>
    %c9 = arith.constant 9 : index
    %c0_73 = arith.constant 0 : index
    %139 = vector.load %arg4[%c9, %c0_73] : memref<16x128xf32, #tpu.memory_space<vmem>>, vector<1x64xf32>
    %c9_74 = arith.constant 9 : index
    %c64_75 = arith.constant 64 : index
    %140 = vector.load %arg4[%c9_74, %c64_75] : memref<16x128xf32, #tpu.memory_space<vmem>>, vector<1x64xf32>
    %c10 = arith.constant 10 : index
    %c0_76 = arith.constant 0 : index
    %141 = vector.load %arg4[%c10, %c0_76] : memref<16x128xf32, #tpu.memory_space<vmem>>, vector<1x64xf32>
    %c10_77 = arith.constant 10 : index
    %c64_78 = arith.constant 64 : index
    %142 = vector.load %arg4[%c10_77, %c64_78] : memref<16x128xf32, #tpu.memory_space<vmem>>, vector<1x64xf32>
    %c11 = arith.constant 11 : index
    %c0_79 = arith.constant 0 : index
    %143 = vector.load %arg4[%c11, %c0_79] : memref<16x128xf32, #tpu.memory_space<vmem>>, vector<1x64xf32>
    %c11_80 = arith.constant 11 : index
    %c64_81 = arith.constant 64 : index
    %144 = vector.load %arg4[%c11_80, %c64_81] : memref<16x128xf32, #tpu.memory_space<vmem>>, vector<1x64xf32>
    %c12 = arith.constant 12 : index
    %c0_82 = arith.constant 0 : index
    %145 = vector.load %arg4[%c12, %c0_82] : memref<16x128xf32, #tpu.memory_space<vmem>>, vector<1x128xf32>
    %c13 = arith.constant 13 : index
    %c0_83 = arith.constant 0 : index
    %146 = vector.load %arg4[%c13, %c0_83] : memref<16x128xf32, #tpu.memory_space<vmem>>, vector<1x64xf32>
    %147 = arith.truncf %126 : vector<8x64xf32> to vector<8x64xbf16>
    %cst_84 = arith.constant dense<0.000000e+00> : vector<8x64xf32>
    %148 = tpu.matmul %147, %127, %cst_84 {dimension_numbers = #tpu.dot_dimension_numbers<[1], [0], [0], [1], [0, 0, 1, 1], [], []>} : vector<8x64xbf16>, vector<64x64xbf16>, vector<8x64xf32> -> vector<8x64xf32>
    %149 = vector.broadcast %137 : vector<1x64xf32> to vector<8x64xf32>
    %150 = arith.addf %148, %149 : vector<8x64xf32>
    %cst_85 = arith.constant 0.000000e+00 : f32
    %151 = vector.broadcast %cst_85 : f32 to vector<8x64xf32>
    %152 = arith.maximumf %150, %151 : vector<8x64xf32>
    %cst_86 = arith.constant dense<0.000000e+00> : vector<64x64xf32>
    %153 = tpu.matmul %4, %128, %cst_86 {dimension_numbers = #tpu.dot_dimension_numbers<[1], [0], [0], [1], [0, 0, 1, 1], [], []>} : vector<64x64xbf16>, vector<64x64xbf16>, vector<64x64xf32> -> vector<64x64xf32>
    %154 = vector.broadcast %138 : vector<1x64xf32> to vector<64x64xf32>
    %155 = arith.addf %153, %154 : vector<64x64xf32>
    %cst_87 = arith.constant 0.000000e+00 : f32
    %156 = vector.broadcast %cst_87 : f32 to vector<64x64xf32>
    %157 = arith.maximumf %155, %156 : vector<64x64xf32>
    %158 = vector.shape_cast %152 : vector<8x64xf32> to vector<8x1x64xf32>
    %159 = vector.shape_cast %158 : vector<8x1x64xf32> to vector<8x1x64xf32>
    %160 = vector.broadcast %159 : vector<8x1x64xf32> to vector<8x8x64xf32>
    %161 = vector.shape_cast %160 : vector<8x8x64xf32> to vector<64x64xf32>
    %162 = arith.truncf %161 : vector<64x64xf32> to vector<64x64xbf16>
    %163 = arith.truncf %157 : vector<64x64xf32> to vector<64x64xbf16>
    %cst_88 = arith.constant dense<0.000000e+00> : vector<64x8xf32>
    %164 = tpu.matmul %162, %133, %cst_88 {dimension_numbers = #tpu.dot_dimension_numbers<[1], [0], [0], [1], [0, 0, 1, 1], [], []>} : vector<64x64xbf16>, vector<64x8xbf16>, vector<64x8xf32> -> vector<64x8xf32>
    %cst_89 = arith.constant dense<0.000000e+00> : vector<64x8xf32>
    %165 = tpu.matmul %163, %134, %cst_89 {dimension_numbers = #tpu.dot_dimension_numbers<[1], [0], [0], [1], [0, 0, 1, 1], [], []>} : vector<64x64xbf16>, vector<64x8xbf16>, vector<64x8xf32> -> vector<64x8xf32>
    %166 = arith.addf %164, %165 : vector<64x8xf32>
    %167 = vector.shape_cast %166 : vector<64x8xf32> to vector<8x8x8xf32>
    %cst_90 = arith.constant dense<0xFF800000> : vector<8x8xf32>
    %168 = vector.multi_reduction <maximumf>, %167, %cst_90 [0] : vector<8x8x8xf32> to vector<8x8xf32>
    %169 = vector.shape_cast %168 : vector<8x8xf32> to vector<1x8x8xf32>
    %170 = vector.broadcast %169 : vector<1x8x8xf32> to vector<8x8x8xf32>
    %171 = arith.subf %167, %170 : vector<8x8x8xf32>
    %172 = math.exp %171 : vector<8x8x8xf32>
    %cst_91 = arith.constant dense<0.000000e+00> : vector<8x8xf32>
    %173 = vector.multi_reduction <add>, %172, %cst_91 [0] : vector<8x8x8xf32> to vector<8x8xf32>
    %174 = vector.shape_cast %173 : vector<8x8xf32> to vector<1x8x8xf32>
    %175 = vector.broadcast %174 : vector<1x8x8xf32> to vector<8x8x8xf32>
    %176 = arith.divf %172, %175 : vector<8x8x8xf32>
    %177 = vector.shape_cast %176 : vector<8x8x8xf32> to vector<64x8xf32>
    %178 = arith.mulf %161, %157 : vector<64x64xf32>
    %179 = arith.truncf %178 : vector<64x64xf32> to vector<64x64xbf16>
    %cst_92 = arith.constant dense<0.000000e+00> : vector<64x64xf32>
    %180 = tpu.matmul %179, %129, %cst_92 {dimension_numbers = #tpu.dot_dimension_numbers<[1], [0], [0], [1], [0, 0, 1, 1], [], []>} : vector<64x64xbf16>, vector<64x64xbf16>, vector<64x64xf32> -> vector<64x64xf32>
    %181 = vector.broadcast %139 : vector<1x64xf32> to vector<64x64xf32>
    %182 = arith.addf %180, %181 : vector<64x64xf32>
    %cst_93 = arith.constant dense<0.000000e+00> : vector<64x64xf32>
    %183 = tpu.matmul %177, %136, %cst_93 {dimension_numbers = #tpu.dot_dimension_numbers<[1], [0], [0], [1], [0, 0, 1, 1], [], []>} : vector<64x8xf32>, vector<8x64xf32>, vector<64x64xf32> -> vector<64x64xf32>
    %184 = arith.mulf %183, %182 : vector<64x64xf32>
    %185 = vector.shape_cast %184 : vector<64x64xf32> to vector<8x8x64xf32>
    %cst_94 = arith.constant dense<0.000000e+00> : vector<8x64xf32>
    %186 = vector.multi_reduction <add>, %185, %cst_94 [0] : vector<8x8x64xf32> to vector<8x64xf32>
    %cst_95 = arith.constant 0.000000e+00 : f32
    %187 = vector.broadcast %cst_95 : f32 to vector<8x64xf32>
    %188 = arith.maximumf %186, %187 : vector<8x64xf32>
    %189 = arith.truncf %188 : vector<8x64xf32> to vector<8x64xbf16>
    %cst_96 = arith.constant dense<0.000000e+00> : vector<8x64xf32>
    %190 = tpu.matmul %189, %130, %cst_96 {dimension_numbers = #tpu.dot_dimension_numbers<[1], [0], [0], [1], [0, 0, 1, 1], [], []>} : vector<8x64xbf16>, vector<64x64xbf16>, vector<8x64xf32> -> vector<8x64xf32>
    %191 = vector.broadcast %140 : vector<1x64xf32> to vector<8x64xf32>
    %192 = arith.addf %190, %191 : vector<8x64xf32>
    %193 = arith.addf %126, %192 : vector<8x64xf32>
    %cst_97 = arith.constant dense<0.000000e+00> : vector<8xf32>
    %194 = vector.multi_reduction <add>, %193, %cst_97 [1] : vector<8x64xf32> to vector<8xf32>
    %195 = vector.shape_cast %194 : vector<8xf32> to vector<8x1xf32>
    %cst_98 = arith.constant 6.400000e+01 : f32
    %196 = vector.broadcast %cst_98 : f32 to vector<8x1xf32>
    %197 = arith.divf %195, %196 : vector<8x1xf32>
    %198 = vector.broadcast %197 : vector<8x1xf32> to vector<8x64xf32>
    %199 = arith.subf %193, %198 : vector<8x64xf32>
    %200 = arith.mulf %199, %199 : vector<8x64xf32>
    %cst_99 = arith.constant dense<0.000000e+00> : vector<8xf32>
    %201 = vector.multi_reduction <add>, %200, %cst_99 [1] : vector<8x64xf32> to vector<8xf32>
    %202 = vector.shape_cast %201 : vector<8xf32> to vector<8x1xf32>
    %cst_100 = arith.constant 6.400000e+01 : f32
    %203 = vector.broadcast %cst_100 : f32 to vector<8x1xf32>
    %204 = arith.divf %202, %203 : vector<8x1xf32>
    %205 = vector.broadcast %197 : vector<8x1xf32> to vector<8x64xf32>
    %206 = arith.subf %193, %205 : vector<8x64xf32>
    %cst_101 = arith.constant 9.99999974E-6 : f32
    %207 = vector.broadcast %cst_101 : f32 to vector<8x1xf32>
    %208 = arith.addf %204, %207 : vector<8x1xf32>
    %209 = math.rsqrt %208 : vector<8x1xf32>
    %210 = vector.broadcast %209 : vector<8x1xf32> to vector<8x64xf32>
    %211 = arith.mulf %206, %210 : vector<8x64xf32>
    %212 = vector.broadcast %141 : vector<1x64xf32> to vector<8x64xf32>
    %213 = arith.mulf %211, %212 : vector<8x64xf32>
    %214 = vector.broadcast %142 : vector<1x64xf32> to vector<8x64xf32>
    %215 = arith.addf %213, %214 : vector<8x64xf32>
    %216 = arith.truncf %215 : vector<8x64xf32> to vector<8x64xbf16>
    %cst_102 = arith.constant dense<0.000000e+00> : vector<8x128xf32>
    %217 = tpu.matmul %216, %131, %cst_102 {dimension_numbers = #tpu.dot_dimension_numbers<[1], [0], [0], [1], [0, 0, 1, 1], [], []>} : vector<8x64xbf16>, vector<64x128xbf16>, vector<8x128xf32> -> vector<8x128xf32>
    %218 = vector.broadcast %145 : vector<1x128xf32> to vector<8x128xf32>
    %219 = arith.addf %217, %218 : vector<8x128xf32>
    %cst_103 = arith.constant 0.000000e+00 : f32
    %220 = vector.broadcast %cst_103 : f32 to vector<8x128xf32>
    %221 = arith.maximumf %219, %220 : vector<8x128xf32>
    %222 = arith.truncf %221 : vector<8x128xf32> to vector<8x128xbf16>
    %cst_104 = arith.constant dense<0.000000e+00> : vector<8x64xf32>
    %223 = tpu.matmul %222, %132, %cst_104 {dimension_numbers = #tpu.dot_dimension_numbers<[1], [0], [0], [1], [0, 0, 1, 1], [], []>} : vector<8x128xbf16>, vector<128x64xbf16>, vector<8x64xf32> -> vector<8x64xf32>
    %224 = vector.broadcast %146 : vector<1x64xf32> to vector<8x64xf32>
    %225 = arith.addf %223, %224 : vector<8x64xf32>
    %226 = arith.addf %215, %225 : vector<8x64xf32>
    %cst_105 = arith.constant dense<0.000000e+00> : vector<8xf32>
    %227 = vector.multi_reduction <add>, %226, %cst_105 [1] : vector<8x64xf32> to vector<8xf32>
    %228 = vector.shape_cast %227 : vector<8xf32> to vector<8x1xf32>
    %cst_106 = arith.constant 6.400000e+01 : f32
    %229 = vector.broadcast %cst_106 : f32 to vector<8x1xf32>
    %230 = arith.divf %228, %229 : vector<8x1xf32>
    %231 = vector.broadcast %230 : vector<8x1xf32> to vector<8x64xf32>
    %232 = arith.subf %226, %231 : vector<8x64xf32>
    %233 = arith.mulf %232, %232 : vector<8x64xf32>
    %cst_107 = arith.constant dense<0.000000e+00> : vector<8xf32>
    %234 = vector.multi_reduction <add>, %233, %cst_107 [1] : vector<8x64xf32> to vector<8xf32>
    %235 = vector.shape_cast %234 : vector<8xf32> to vector<8x1xf32>
    %cst_108 = arith.constant 6.400000e+01 : f32
    %236 = vector.broadcast %cst_108 : f32 to vector<8x1xf32>
    %237 = arith.divf %235, %236 : vector<8x1xf32>
    %238 = vector.broadcast %230 : vector<8x1xf32> to vector<8x64xf32>
    %239 = arith.subf %226, %238 : vector<8x64xf32>
    %cst_109 = arith.constant 9.99999974E-6 : f32
    %240 = vector.broadcast %cst_109 : f32 to vector<8x1xf32>
    %241 = arith.addf %237, %240 : vector<8x1xf32>
    %242 = math.rsqrt %241 : vector<8x1xf32>
    %243 = vector.broadcast %242 : vector<8x1xf32> to vector<8x64xf32>
    %244 = arith.mulf %239, %243 : vector<8x64xf32>
    %245 = vector.broadcast %143 : vector<1x64xf32> to vector<8x64xf32>
    %246 = arith.mulf %244, %245 : vector<8x64xf32>
    %247 = vector.broadcast %144 : vector<1x64xf32> to vector<8x64xf32>
    %248 = arith.addf %246, %247 : vector<8x64xf32>
    %c0_110 = arith.constant 0 : index
    %c0_111 = arith.constant 0 : index
    %c0_112 = arith.constant 0 : index
    %249 = vector.load %arg5[%c0_110, %c0_111, %c0_112] : memref<1x8x64xf32, #tpu.memory_space<vmem>>, vector<1x8x64xf32>
    %250 = vector.shape_cast %249 : vector<1x8x64xf32> to vector<8x64xf32>
    %251 = vector.shape_cast %248 : vector<8x64xf32> to vector<1x8x64xf32>
    tpu.vector_store %arg5[%c0_110, %c0_111, %c0_112], %251 {strides = array<i32>} : memref<1x8x64xf32, #tpu.memory_space<vmem>>, vector<1x8x64xf32>,
    return
  }
  func.func @transform_0(%arg0: i32) -> (i32, i32, i32) {
    %c0_i32 = arith.constant 0 : i32
    %c0_i32_0 = arith.constant 0 : i32
    %c0_i32_1 = arith.constant 0 : i32
    return %arg0, %c0_i32, %c0_i32_0 : i32, i32, i32
  }
  func.func @transform_1(%arg0: i32) -> (i32, i32, i32) {
    %c0_i32 = arith.constant 0 : i32
    %c0_i32_0 = arith.constant 0 : i32
    %c0_i32_1 = arith.constant 0 : i32
    return %arg0, %c0_i32, %c0_i32_0 : i32, i32, i32
  }
  func.func @transform_2(%arg0: i32) -> (i32, i32) {
    %c0_i32 = arith.constant 0 : i32
    %c0_i32_0 = arith.constant 0 : i32
    %c0_i32_1 = arith.constant 0 : i32
    return %c0_i32, %c0_i32_0 : i32, i32
  }
  func.func @transform_3(%arg0: i32) -> (i32, i32) {
    %c0_i32 = arith.constant 0 : i32
    %c0_i32_0 = arith.constant 0 : i32
    %c0_i32_1 = arith.constant 0 : i32
    return %c0_i32, %c0_i32_0 : i32, i32
  }
  func.func @transform_4(%arg0: i32) -> (i32, i32, i32) {
    %c0_i32 = arith.constant 0 : i32
    %c0_i32_0 = arith.constant 0 : i32
    %c0_i32_1 = arith.constant 0 : i32
    return %arg0, %c0_i32, %c0_i32_0 : i32, i32, i32
  }
}

</mosaic_0001>

<bundles_post_ra>
// kernel: _encoder_batched.1
= control target key start
LH: loop header
LB: loop body
LE: loop exit
PB: predicated region body
PF: predicated region fallthrough
CT: control target
= control target key end

     0   :  { %s3030_s0 = inlined_call_operand.hbm [shape: f32[4,8,64], index: 0, kind: input, shape index: {}]   ;;  %s3031_s1 = inlined_call_operand.hbm [shape: f32[4,64,64], index: 1, kind: input, shape index: {}]   ;;  %s3032_s2 = inlined_call_operand.hbm [shape: bf16[800,128], index: 2, kind: input, shape index: {}]   ;;  %s3033_s3 = inlined_call_operand.hbm [shape: f32[16,128], index: 3, kind: input, shape index: {}]   ;;  %s3034_s4 = inlined_call_operand.hbm [shape: f32[4,8,64], index: 4, kind: output, shape index: {}]  }
   0x1   :  { %3037 = sst [smem:[#allocation17_spill]] %s3032_s2 }
   0x2   :  { %3038 = sst [smem:[#allocation18_spill]] %s3033_s3 }
   0x3   :  { %9 = vsyncpa [#allocation3], 0 }
   0x4   :  { %11 = vsyncpa [#allocation3 + $0x1], 0 }
   0x5   :  { %12 = vsyncpa [#allocation6], 0 }
   0x6   :  { %14 = vsyncpa [#allocation6 + $0x1], 0 }
   0x7   :  { %15 = vsyncpa [#allocation9], 0 }
   0x8   :  { %16 = vsyncpa [#allocation4], 0 }
   0x9   :  { %18 = vsyncpa [#allocation4 + $0x1], 0  ;;  %s2628_s15 = smov 0   ;;  %s2630_s16 = smov 0  }
   0xa   :  { %s2632_s17 = smov 0   ;;  %s2634_s18 = smov 0  }
   0xb LB: > { %s3039_s2 = sld [smem:[#allocation17_spill]]  ;;  %s2652_s22 = sadd.s32 4294967295, %s2592_s18   ;;  %s2592_s18 = sphi %s2634_s18, %s3054_s18   ;;  %s2588_s17 = sphi %s2632_s17, %s3053_s17   ;;  %s2584_s16 = sphi %s2630_s16, %s3052_s16   ;;  %s2580_s15 = sphi %s2628_s15, %s3051_s15  }
   0xc   : > { %p1943_p0 = scmp.ge.s32.totalorder %s2592_s18, 1  ;;  %p45_p1 = scmp.eq.s32.totalorder %s2652_s22, 0 }
   0xd   : > { %p149_p2 = scmp.lt.s32.totalorder %s2592_s18, 5  ;;  %s2594_s24 = smov [#allocation7]  }
   0xe   : > { %s162_s25 = sshll.u32 %s2594_s24, 4  ;;  %s3041_s3 = sld [smem:[#allocation18_spill]]  ;;  %s163_s25 = int_to_ptr.vmem [resolvable:$true] %s162_s25 }
   0xf   : > { %p2657_p3 = pnand %p1943_p0, %p149_p2  ;;  %s2595_s29 = smov [#allocation8]  }
  0x10   : > { %s176_s30 = sshll.u32 %s2595_s29, 4  ;;  %s2596_s5 = smov 64   ;;  %s177_s30 = int_to_ptr.vmem [resolvable:$true] %s176_s30 }
  0x11   : > { %s160_s21 = sshll.u32 %s3039_s2, 4  ;;  %p2271_p4 = pneg %p2657_p3  ;;  %s161_s21 = int_to_ptr.hbm [resolvable:$true] %s160_s21 }
  0x12   : > { %s2597_s6 = smov 4   ;;  %s3035_s7 = smov 128  }
  0x13   : > { %p2272_p5 = pnand %p2271_p4, %p45_p1  ;;  %s3036_s8 = smov 8  }
  0x14   : > { %s174_s28 = sshll.u32 %s3041_s3, 4  ;;  %s1942_s9 = sadd.s32 4294967294, %s2592_s18   ;;  %s175_s28 = int_to_ptr.hbm [resolvable:$true] %s174_s28 }
  0x15   : > { %2274 = dma.hbm_to_vmem [thread:$0]  (!%p2272_p5), %s161_s21, 6400, %s163_s25, [#allocation6], %s2596_s5, %s2596_s5, %s2597_s6  }
  0x16   : > { %2277 = dma.hbm_to_vmem [thread:$0]  (!%p2272_p5), %s175_s28, 256, %s177_s30, [#allocation9], %s3035_s7, %s3035_s7, %s3036_s8  }
  0x17   : > { %s2673_s10 = sadd.s32 1, %s2592_s18   ;;  %s31_s12 = sadd.s32 1, %s2588_s17 }
  0x18   : > { %s28_s11 = ssub.s32 %s2592_s18, %s2673_s10  ;;  %p38_p7 = scmp.ne.s32.totalorder %s2588_s17, %s2584_s16 }
  0x19   : > { %p29_p6 = scmp.eq.s32.totalorder %s28_s11, 0  ;;  %p39_p8 = scmp.eq.s32.totalorder %s2592_s18, 0 }
  0x1a   : > { %p44_p9 = scmp.ne.s32.totalorder %s2584_s16, %s2580_s15  ;;  %p136_p12 = scmp.eq.s32.totalorder %s2652_s22, 3 }
  0x1b   : > { %s2684_s13 = scalar_select %p29_p6, %s2588_s17, %s31_s12  }
  0x1c   : > { %p2686_p10 = por %p39_p8, %p38_p7  ;;  %p2692_p11 = por %p45_p1, %p44_p9 }
  0x1d   : > { %3042 = sst [smem:[#allocation16_spill]] %s2684_s13  ;;  %p142_p13 = scmp.eq.s32.totalorder %s1942_s9, 3 }
  0x1e   : > { %p2291_p0 = scmp.lt.s32.totalorder %s2592_s18, 4  ;;  %s2699_s20 = sand.u32 1, %s2588_s17  }
  0x1f   : > { %p2701_p2 = por %p136_p12, %p38_p7  ;;  %p2705_p4 = por %p142_p13, %p44_p9 }
  0x20   : > { %s1947_s25 = sshll.u32 %s2699_s20, 3  ;;  %s1948_s26 = sshll.u32 %s2592_s18, 3 }
  0x21   : > { %s198_s29 = scalar_lea.hbm %s3030_s0, %s1948_s26  ;;  %s194_s30 = scalar_lea.vmem [#allocation2], %s1947_s25 }
  0x22   : > { %s202_s5 = sshll.u32 %s194_s30, 4  ;;  %s200_s6 = sshll.u32 %s198_s29, 4  ;;  %s203_s5 = int_to_ptr.vmem [resolvable:$true] %s202_s5  ;;  %s201_s6 = int_to_ptr.hbm [resolvable:$true] %s200_s6 }
  0x23   : > { %p2716_p5 = pnand %p2291_p0, %p2686_p10  ;;  %s1949_s11 = sshll.u32 %s2699_s20, 6 }
  0x24   : > { %s209_s12 = sand.u32 1, %s2592_s18   ;;  %s191_s7 = scalar_lea.sflag [#allocation3], %s2699_s20 }
  0x25   : > { %s2454_s8 = sshra.s32 %s201_s6, 4  ;;  %p2458_p7 = pneg %p2716_p5  ;;  %s2455_s8 = int_to_ptr.hbm [resolvable:$true] %s2454_s8 }
  0x26   : > { %s2456_s2 = scalar_lea.hbm %s2455_s8, 8  ;;  %s2461_s26 = scalar_lea.hbm %s3030_s0, 32 }
  0x27   : > { %p2457_p6 = scmp.ne.s32.totalorder %s2455_s8, %s2456_s2  ;;  %p2462_p10 = scmp.lt.s32.totalorder %s2455_s8, %s3030_s0 }
  0x28   : > { %p2463_p12 = scmp.lt.s32.totalorder %s2461_s26, %s2456_s2 }
  0x29   : > { %p2459_p8 = pnand %p2458_p7, %p2457_p6 }
  0x2a   : > { %p2464_p13 = por %p2463_p12, %p2462_p10 }
  0x2b   : > { %p2460_p9 = pneg %p2459_p8 }
  0x2d   : > { %p2465_p0 = pnand %p2464_p13, %p2460_p9 }
  0x2f   : > { %2468 = shalt.err (!%p2465_p0)
}
  0x30   : > { %2281 = dma.hbm_to_vmem [thread:$0]  (!%p2716_p5), %s201_s6, 128, %s203_s5, %s191_s7  }
  0x31   : > { %s213_s20 = scalar_lea.vmem [#allocation5], %s1949_s11  ;;  %s2208_s30 = sshll.u32 %s2592_s18, 6 }
  0x32   : > { %s221_s29 = sshll.u32 %s213_s20, 4  ;;  %s218_s25 = scalar_lea.hbm %s3031_s1, %s2208_s30  ;;  %s222_s29 = int_to_ptr.vmem [resolvable:$true] %s221_s29 }
  0x33   : > { %s219_s13 = sshll.u32 %s218_s25, 4  ;;  %s210_s8 = scalar_lea.sflag [#allocation6], %s209_s12  ;;  %s220_s13 = int_to_ptr.hbm [resolvable:$true] %s219_s13 }
  0x34   : > { %s2484_s2 = sshra.s32 %s220_s13, 4  ;;  %s2491_s6 = scalar_lea.hbm %s3031_s1, 256  ;;  %s2485_s2 = int_to_ptr.hbm [resolvable:$true] %s2484_s2 }
  0x35   : > { %s2486_s26 = scalar_lea.hbm %s2485_s2, 64  ;;  %p2492_p10 = scmp.lt.s32.totalorder %s2485_s2, %s3031_s1 }
  0x36   : > { %p2487_p6 = scmp.ne.s32.totalorder %s2485_s2, %s2486_s26  ;;  %p2493_p12 = scmp.lt.s32.totalorder %s2491_s6, %s2486_s26 }
  0x38   : > { %p2489_p8 = pnand %p2487_p6, %p2458_p7  ;;  %p2494_p13 = por %p2493_p12, %p2492_p10 }
  0x3a   : > { %p2490_p9 = pneg %p2489_p8 }
  0x3c   : > { %p2495_p0 = pnand %p2494_p13, %p2490_p9 }
  0x3e   : > { %2498 = shalt.err (!%p2495_p0)
}
  0x3f   : > { %s3048_s3 = smov 8   ;;  %s3049_s12 = smov 128  }
  0x40   : > { %2284 = dma.hbm_to_vmem [thread:$0]  (!%p2716_p5), %s220_s13, 1024, %s222_s29, %s210_s8, %s3049_s12, %s3049_s12, %s3048_s3  }
  0x41   : > { %233 = sbr.rel (%p2657_p3) target bundleno = 3252 (0xcb4), region = 36  ;;  %s2757_s28 = sand.u32 (!%p2657_p3), 1, %s2584_s16  }
  0x42   : > { %s1953_s20 = sshll.u32 (!%p2657_p3), %s2757_s28, 3  ;;  %s236_s30 = scalar_lea.sflag (!%p2657_p3), [#allocation3], %s2757_s28 }
  0x43   : > { %s239_s14 = scalar_lea.vmem (!%p2657_p3), [#allocation2], %s1953_s20 }
  0x46   : > { %2559 = dma.done.wait (%p2692_p11), %s236_s30, 128  }
  0x47   : > { %2561 = vsyncadd (%p2692_p11), %s236_s30, 4294967168  ;;  %s245_s23 = sand.u32 1, %s2652_s22   ;;  %s1954_s13 = sshll.u32 %s2757_s28, 6 }
  0x48   : > { %s246_s9 = scalar_lea.sflag [#allocation6], %s245_s23  ;;  %s2769_s29 = scalar_lea.vmem [#allocation5], %s1954_s13 }
  0x49   : > { %2563 = dma.done.wait (%p2692_p11), %s246_s9, 1024  }
  0x4a   : > { %2565 = vsyncadd (%p2692_p11), %s246_s9, 4294966272 }
  0x4b   : > { %2567 = dma.done.wait (%p45_p1), [#allocation6], 6400  }
  0x4c   : > { %2569 = vsyncadd (%p45_p1), [#allocation6], 4294960896 }
  0x4d   : > { %2571 = dma.done.wait (%p45_p1), [#allocation9], 256  }
  0x4e   : > { %2573 = vsyncadd (%p45_p1), [#allocation9], 4294967040  ;;  %v2212_v0 = vld [vmem:[#allocation7 + $0x18] sm:$0xff]  ;;  %v2210_v1 = vld [vmem:[#allocation7 + $0x8] sm:$0xff]  ;;  %s2600_s25 = smov 64   ;;  %vm386_vm0 = vcmask 523264  }
  0x4f   : > { %410 = vrot.lane.b32.xlu0 %v2212_v0, %s2600_s25  ;;  %406 = vrot.lane.b32.xlu1 %v2210_v1, %s2600_s25  ;;  %v2211_v2 = vld [vmem:[#allocation7 + $0x10] sm:$0xff]  ;;  %v2209_v3 = vld [vmem:[#allocation7] sm:$0xff]  ;;  %v2230_v9 = vld [vmem:[#allocation7 + $0xa8] sm:$0xff]  ;;  %s2601_s19 = smov 120   ;;  %vm619_vm1 = vcmask 64512   ;;  %s2205_s8 = sshll.u32 %s2652_s22, 3 }
  0x50   : > { %394 = vmatpush.bf16.msra.mxu2 %v2212_v0  ;;  %v2787_v4 = vld [vmem:[%s239_s14] sm:$0xff]  ;;  %v292_v12 = vld [vmem:[%s2769_s29] sm:$0xff]  ;;  %v293_v13 = vld [vmem:[%s2769_s29 + $0x8] sm:$0xff]  ;;  %s1825_s7 = scalar_lea.hbm %s3034_s4, %s2205_s8  ;;  %s289_s5 = scalar_lea.vmem [#allocation10], %s1953_s20 }
  0x51   : > { %v360_v5 = vpack.c.bf16 %v2787_v4, %v2787_v4  ;;  %v2336_v6 = vld [vmem:[#allocation8] ss:$0 sm:$0xff]  ;;  %v2232_v10 = vld [vmem:[#allocation7 + $0xb8] sm:$0xff]  ;;  %v2797_v15 = vpack.c.bf16 %v293_v13, %v292_v12  ;;  %v2229_v17 = vld [vmem:[#allocation7 + $0xa0] sm:$0xff]  ;;  %s1827_s6 = sshll.u32 %s289_s5, 4  ;;  %s1829_s11 = sshll.u32 %s1825_s7, 4  ;;  %s1828_s6 = int_to_ptr.vmem [resolvable:$true] %s1827_s6  ;;  %s1830_s11 = int_to_ptr.hbm [resolvable:$true] %s1829_s11 }
  0x52   : > { %527 = vrot.lane.b32.xlu2 %v2232_v10, %s2601_s19  ;;  %594 = vmatpush.bf16.msra.mxu3 %v2232_v10  ;;  %v2231_v16 = vld [vmem:[#allocation7 + $0xb0] sm:$0xff]  ;;  %v295_v19 = vld [vmem:[%s2769_s29 + $0x18] sm:$0xff]  ;;  %v296_v28 = vld [vmem:[%s2769_s29 + $0x20] sm:$0xff]  ;;  %s1815_s22 = scalar_lea.sflag [#allocation4], %s2757_s28  ;;  %s2528_s27 = sshra.s32 %s1830_s11, 4  ;;  %s2529_s27 = int_to_ptr.hbm [resolvable:$true] %s2528_s27 }
  0x53   : > { %v294_v18 = vld [vmem:[%s2769_s29 + $0x10] sm:$0xff]  ;;  %v297_v29 = vld [vmem:[%s2769_s29 + $0x28] sm:$0xff]  ;;  %v299_v38 = vld [vmem:[%s2769_s29 + $0x38] sm:$0xff]  ;;  %s2530_s3 = scalar_lea.hbm %s2529_s27, 8  ;;  %s2534_s20 = scalar_lea.hbm %s3034_s4, 32 }
  0x54   : > { %395 = vmatpush.bf16.msra.mxu2 %v2211_v2  ;;  %v2805_v20 = vpack.c.bf16 %v295_v19, %v294_v18  ;;  %v2812_v31 = vpack.c.bf16 %v297_v29, %v296_v28  ;;  %v298_v37 = vld [vmem:[%s2769_s29 + $0x30] sm:$0xff]  ;;  %v2216_v46 = vld [vmem:[#allocation7 + $0x38] sm:$0xff]  ;;  %v2214_v55 = vld [vmem:[#allocation7 + $0x28] sm:$0xff]  ;;  %p2531_p1 = scmp.ne.s32.totalorder %s2529_s27, %s2530_s3  ;;  %p2535_p5 = scmp.lt.s32.totalorder %s2529_s27, %s3034_s4 }
  0x55   : > { %v2819_v39 = vpack.c.bf16 %v299_v38, %v298_v37  ;;  %749 = vmatpush.bf16.msra.mxu0 %v2216_v46  ;;  %v2215_v52 = vld [vmem:[#allocation7 + $0x30] sm:$0xff]  ;;  %v2213_v57 = vld [vmem:[#allocation7 + $0x20] sm:$0xff]  ;;  %p2536_p7 = scmp.lt.s32.totalorder %s2534_s20, %s2530_s3 }
  0x56   : > { %595 = vmatpush.bf16.msra.mxu3 %v2231_v16  ;;  %p2532_p3 = pnand %p2531_p1, %p2701_p2 }
  0x57   : > { %408 = vrot.lane.b32.xlu0 %v2211_v2, %s2600_s25  ;;  %404 = vrot.lane.b32.xlu1 %v2209_v3, %s2600_s25  ;;  %p2537_p6 = por %p2536_p7, %p2535_p5 }
  0x58   : > { %396 = vmatpush.bf16.msra.mxu2 %v2210_v1  ;;  %p2533_p11 = pneg %p2532_p3 }
  0x59   : > { %750 = vmatpush.bf16.msra.mxu0 %v2215_v52 }
  0x5a   : > { %525 = vrot.lane.b32.xlu2 %v2231_v16, %s2601_s19  ;;  %596 = vmatpush.bf16.msra.mxu3 %v2230_v9  ;;  %p2538_p8 = pnand %p2537_p6, %p2533_p11 }
  0x5c   : > { %397 = vmatpush.bf16.msra.mxu2 %v2209_v3 }
  0x5d   : > { %751 = vmatpush.bf16.msra.mxu0 %v2214_v55 }
  0x5e   : > { %597 = vmatpush.bf16.msra.mxu3 %v2229_v17 }
  0x5f   : > { %1974 = vmatmul.msk.bf16.vlgmr.msra.gmra.mxu2 %vm386_vm0, %v360_v5  ;;  %417 = vrot.lane.b32.xlu1 %v2336_v6, %s2600_s25 }
  0x60   : > { %523 = vrot.lane.b32.xlu0 %v2230_v9, %s2601_s19 }
  0x61   : > { %752 = vmatpush.bf16.msra.mxu0 %v2213_v57 }
  0x62   : > { %521 = vrot.lane.b32.xlu2 %v2229_v17, %s2601_s19 }
  0x67   : > { %868 = vrot.lane.b32.xlu1 %v2215_v52, %s2600_s25 }
  0x68   : > { %870 = vrot.lane.b32.xlu0 %v2216_v46, %s2600_s25  ;;  %v352_v46 = vld [vmem:[#allocation7 + $0xc0] sm:$0xf] }
  0x6a   : > { %866 = vrot.lane.b32.xlu2 %v2214_v55, %s2600_s25 }
  0x70   : > { %864 = vrot.lane.b32.xlu0 %v2213_v57, %s2600_s25 }
  0xac   : > { %v528_v45 = vpop.permute.xlu2 %527 }
  0xad   : > { %549 = vmatpush.bf16.msrb.mxu2 %v528_v45 }
  0xb4   : > { %v526_v49 = vpop.permute.xlu2 %525 }
  0xb5   : > { %550 = vmatpush.bf16.msrb.mxu2 %v526_v49 }
  0xbc   : > { %v522_v56 = vpop.permute.xlu2 %521 }
  0xc1   : > { %v411_v7 = vpop.permute.xlu0 %410  ;;  %v407_v8 = vpop.permute.xlu1 %406 }
  0xc2   : > { %436 = vmatpush.bf16.msra.mxu1 %v411_v7 }
  0xc9   : > { %v409_v11 = vpop.permute.xlu0 %408  ;;  %v405_v14 = vpop.permute.xlu1 %404 }
  0xca   : > { %437 = vmatpush.bf16.msra.mxu1 %v409_v11 }
  0xce   : > { %438 = vmatpush.bf16.msra.mxu1 %v407_v8 }
  0xd1   : > { %v418_v59 = vpop.permute.xlu1 %417 }
  0xd2   : > { %439 = vmatpush.bf16.msra.mxu1 %v405_v14  ;;  %v524_v54 = vpop.permute.xlu0 %523 }
  0xd3   : > { %551 = vmatpush.bf16.msrb.mxu2 %v524_v54 }
  0xd5   : > { %1975 = vmatmul.msk.bf16.vlgmr.msra.gmra.mxu1 %vm386_vm0, %v2797_v15 }
  0xd7   : > { %552 = vmatpush.bf16.msrb.mxu2 %v522_v56 }
  0xe2   : > { %v399_v21 = vpop.f32.mrf.mxu2 }
  0xe3   : > { %v400_v22 = vadd.f32 %v2336_v6, %v399_v21 }
  0xe5   : > { %1976 = vmatmul.msk.bf16.gmra.mxu1 %vm386_vm0, %v2805_v20  ;;  %v403_v23 = vmax.f32 %v400_v22, 0.0 }
  0xe7   : > { %v470_v24 = vrot.slane %v403_v23, 1  ;;  %v477_v25 = vperm.slane %v403_v23, 0  ;;  %v471_v32 = vrot.slane %v403_v23, 2  ;;  %v472_v33 = vrot.slane %v403_v23, 3 }
  0xe8   : > { %v473_v40 = vrot.slane %v403_v23, 4  ;;  %v474_v41 = vrot.slane %v403_v23, 5  ;;  %v475_v47 = vrot.slane %v403_v23, 6  ;;  %v476_v48 = vrot.slane %v403_v23, 7 }
  0xe9   : > { %v478_v26 = vperm.slane %v470_v24, 0  ;;  %v479_v34 = vperm.slane %v471_v32, 0  ;;  %v480_v35 = vperm.slane %v472_v33, 0 }
  0xea   : > { %v401_v27 = vpop.f32.mrf.mxu2  ;;  %v481_v42 = vperm.slane %v473_v40, 0  ;;  %v482_v43 = vperm.slane %v474_v41, 0  ;;  %v483_v50 = vperm.slane %v475_v47, 0  ;;  %v484_v51 = vperm.slane %v476_v48, 0  ;;  %v2837_v40 = vld [vmem:[#allocation8 + $0x1] ss:$0 sm:$0xff] }
  0xeb   : > { %v493_v30 = vpack.c.bf16 %v478_v26, %v477_v25  ;;  %v494_v36 = vpack.c.bf16 %v480_v35, %v479_v34  ;;  %877 = vrot.lane.b32.xlu1 %v2837_v40, %s2600_s25  ;;  %v353_v47 = vunpack.c.l.bf16 %v352_v46 }
  0xec   : > { %v495_v44 = vpack.c.bf16 %v482_v43, %v481_v42  ;;  %v496_v53 = vpack.c.bf16 %v484_v51, %v483_v50 }
  0xed   : > { %1999 = vmatmul.msk.bf16.vlgmr.msra.gmra.mxu3 %vm386_vm0, %v493_v30  ;;  %813 = vmatpush.msrb.mxu1 %v353_v47 }
  0xf5   : > { %1977 = vmatmul.msk.bf16.gmra.mxu1 %vm386_vm0, %v2812_v31 }
  0xfd   : > { %2000 = vmatmul.msk.bf16.gmra.mxu3 %vm386_vm0, %v494_v36 }
 0x105   : > { %1978 = vmatmul.msk.bf16.gmra.mxu1 %vm386_vm0, %v2819_v39 }
 0x10d   : > { %2001 = vmatmul.msk.bf16.gmra.mxu3 %vm386_vm0, %v495_v44 }
 0x11d   : > { %2002 = vmatmul.msk.bf16.gmra.mxu3 %vm386_vm0, %v496_v53 }
 0x152   : > { %v441_v58 = vpop.f32.mrf.mxu1 }
 0x153   : > { %v442_v60 = vadd.f32 %v441_v58, %v418_v59 }
 0x155   : > { %v461_v62 = vmax.f32 %v442_v60, 0.0 }
 0x157   : > { %v696_v1 = vmul.f32 %v477_v25, %v461_v62 }
 0x15a   : > { %v443_v61 = vpop.f32.mrf.mxu1 }
 0x15b   : > { %v444_v63 = vadd.f32 %v443_v61, %v418_v59 }
 0x15d   : > { %v462_v0 = vmax.f32 %v444_v63, 0.0 }
 0x15f   : > { %v497_v2 = vpack.c.bf16 %v462_v0, %v461_v62  ;;  %v697_v3 = vmul.f32 %v478_v26, %v462_v0 }
 0x161   : > { %1995 = vmatmul.msk.bf16.vlgmr.msrb.gmra.mxu2 %vm386_vm0, %v497_v2  ;;  %v704_v5 = vpack.c.bf16 %v697_v3, %v696_v1 }
 0x162   : > { %v446_v6 = vpop.f32.mrf.mxu1 }
 0x163   : > { %2019 = vmatmul.msk.bf16.vlgmr.msra.gmra.mxu0 %vm386_vm0, %v704_v5  ;;  %v447_v7 = vadd.f32 %v446_v6, %v418_v59 }
 0x165   : > { %v463_v9 = vmax.f32 %v447_v7, 0.0 }
 0x167   : > { %v698_v12 = vmul.f32 %v479_v34, %v463_v9 }
 0x16a   : > { %v448_v8 = vpop.f32.mrf.mxu1 }
 0x16b   : > { %v449_v10 = vadd.f32 %v448_v8, %v418_v59 }
 0x16d   : > { %v464_v11 = vmax.f32 %v449_v10, 0.0 }
 0x16f   : > { %v498_v13 = vpack.c.bf16 %v464_v11, %v463_v9  ;;  %v699_v14 = vmul.f32 %v480_v35, %v464_v11 }
 0x170   : > { %v599_v41 = vpop.f32.mrf.mxu3 }
 0x171   : > { %1996 = vmatmul.msk.bf16.gmra.mxu2 %vm386_vm0, %v498_v13  ;;  %v705_v16 = vpack.c.bf16 %v699_v14, %v698_v12 }
 0x172   : > { %v451_v17 = vpop.f32.mrf.mxu1 }
 0x173   : > { %2020 = vmatmul.msk.bf16.gmra.mxu0 %vm386_vm0, %v705_v16  ;;  %v452_v18 = vadd.f32 %v451_v17, %v418_v59 }
 0x175   : > { %v465_v21 = vmax.f32 %v452_v18, 0.0 }
 0x177   : > { %v700_v24 = vmul.f32 %v481_v42, %v465_v21 }
 0x178   : > { %v601_v42 = vpop.f32.mrf.mxu3 }
 0x17a   : > { %v453_v19 = vpop.f32.mrf.mxu1 }
 0x17b   : > { %v454_v22 = vadd.f32 %v453_v19, %v418_v59 }
 0x17d   : > { %v466_v23 = vmax.f32 %v454_v22, 0.0 }
 0x17f   : > { %v499_v25 = vpack.c.bf16 %v466_v23, %v465_v21  ;;  %v701_v26 = vmul.f32 %v482_v43, %v466_v23 }
 0x180   : > { %v604_v44 = vpop.f32.mrf.mxu3 }
 0x181   : > { %1997 = vmatmul.msk.bf16.gmra.mxu2 %vm386_vm0, %v499_v25  ;;  %v706_v27 = vpack.c.bf16 %v701_v26, %v700_v24 }
 0x182   : > { %v456_v28 = vpop.f32.mrf.mxu1 }
 0x183   : > { %2021 = vmatmul.msk.bf16.gmra.mxu0 %vm386_vm0, %v706_v27  ;;  %v457_v29 = vadd.f32 %v456_v28, %v418_v59 }
 0x185   : > { %v467_v32 = vmax.f32 %v457_v29, 0.0 }
 0x187   : > { %v702_v35 = vmul.f32 %v483_v50, %v467_v32 }
 0x188   : > { %v606_v48 = vpop.f32.mrf.mxu3 }
 0x18a   : > { %v458_v30 = vpop.f32.mrf.mxu1 }
 0x18b   : > { %v459_v33 = vadd.f32 %v458_v30, %v418_v59 }
 0x18d   : > { %v468_v34 = vmax.f32 %v459_v33, 0.0 }
 0x18f   : > { %v500_v36 = vpack.c.bf16 %v468_v34, %v467_v32  ;;  %v703_v37 = vmul.f32 %v484_v51, %v468_v34 }
 0x190   : > { %v609_v51 = vpop.f32.mrf.mxu3 }
 0x191   : > { %1998 = vmatmul.msk.bf16.gmra.mxu2 %vm386_vm0, %v500_v36  ;;  %v707_v38 = vpack.c.bf16 %v703_v37, %v702_v35 }
 0x193   : > { %2022 = vmatmul.msk.bf16.gmra.mxu0 %vm386_vm0, %v707_v38 }
 0x198   : > { %v611_v53 = vpop.f32.mrf.mxu3 }
 0x1a0   : > { %v614_v55 = vpop.f32.mrf.mxu3 }
 0x1a8   : > { %v616_v1 = vpop.f32.mrf.mxu3 }
 0x1e4   : > { %v554_v43 = vpop.f32.mrf.mxu2 }
 0x1e5   : > { %v600_v61 = vadd.f32 %v599_v41, %v554_v43 }
 0x1e7   : > { %v620_v9 = vsel %vm619_vm1, %v600_v61, -inf }
 0x1ec   : > { %v556_v45 = vpop.f32.mrf.mxu2 }
 0x1ed   : > { %v602_v58 = vadd.f32 %v601_v42, %v556_v45 }
 0x1ef   : > { %v621_v3 = vsel %vm619_vm1, %v602_v58, -inf }
 0x1f4   : > { %v559_v49 = vpop.f32.mrf.mxu2 }
 0x1f5   : > { %v605_v62 = vadd.f32 %v604_v44, %v559_v49 }
 0x1f7   : > { %v622_v10 = vsel %vm619_vm1, %v605_v62, -inf }
 0x1fc   : > { %v561_v50 = vpop.f32.mrf.mxu2 }
 0x1fd   : > { %v607_v63 = vadd.f32 %v606_v48, %v561_v50 }
 0x1ff   : > { %v623_v11 = vsel %vm619_vm1, %v607_v63, -inf }
 0x204   : > { %v564_v52 = vpop.f32.mrf.mxu2 }
 0x205   : > { %v610_v59 = vadd.f32 %v609_v51, %v564_v52 }
 0x207   : > { %v624_v5 = vsel %vm619_vm1, %v610_v59, -inf }
 0x208   : > { %v625_v13 = vmax.f32 %v620_v9, %v624_v5 }
 0x20c   : > { %v566_v54 = vpop.f32.mrf.mxu2 }
 0x20d   : > { %v612_v57 = vadd.f32 %v611_v53, %v566_v54 }
 0x20f   : > { %v626_v0 = vsel %vm619_vm1, %v612_v57, -inf }
 0x210   : > { %v627_v8 = vmax.f32 %v621_v3, %v626_v0 }
 0x212   : > { %v632_v17 = vmax.f32 %v625_v13, %v627_v8 }
 0x214   : > { %v569_v56 = vpop.f32.mrf.mxu2 }
 0x215   : > { %v615_v60 = vadd.f32 %v614_v55, %v569_v56 }
 0x217   : > { %v628_v6 = vsel %vm619_vm1, %v615_v60, -inf }
 0x218   : > { %v629_v14 = vmax.f32 %v622_v10, %v628_v6 }
 0x21c   : > { %v571_v2 = vpop.f32.mrf.mxu2 }
 0x21d   : > { %v617_v7 = vadd.f32 %v616_v1, %v571_v2 }
 0x21f   : > { %v630_v12 = vsel %vm619_vm1, %v617_v7, -inf }
 0x220   : > { %v631_v16 = vmax.f32 %v623_v11, %v630_v12 }
 0x222   : > { %v633_v18 = vmax.f32 %v629_v14, %v631_v16 }
 0x224   : > { %v634_v19 = vmax.f32 %v632_v17, %v633_v18 }
 0x226   : > { %v635_v21 = vsub.f32 %v600_v61, %v634_v19  ;;  %v636_v22 = vsub.f32 %v602_v58, %v634_v19  ;;  %v637_v23 = vsub.f32 %v605_v62, %v634_v19  ;;  %v638_v24 = vsub.f32 %v607_v63, %v634_v19 }
 0x227   : > { %v639_v25 = vsub.f32 %v610_v59, %v634_v19  ;;  %v640_v29 = vsub.f32 %v612_v57, %v634_v19  ;;  %v641_v32 = vsub.f32 %v615_v60, %v634_v19  ;;  %v642_v34 = vsub.f32 %v617_v7, %v634_v19  ;;  %v871_v19 = vpop.permute.xlu0 %870 }
 0x228   : > { %v643_v26 = vmul.f32 1.442695, %v635_v21  ;;  %v645_v27 = vmul.f32 1.442695, %v636_v22  ;;  %v647_v28 = vmul.f32 1.442695, %v637_v23  ;;  %887 = vmatpush.bf16.msra.mxu2 %v871_v19  ;;  %v754_v21 = vpop.f32.mrf.mxu0  ;;  %v869_v22 = vpop.permute.xlu1 %868 }
 0x229   : > { %v649_v30 = vmul.f32 1.442695, %v638_v24  ;;  %v651_v33 = vmul.f32 1.442695, %v639_v25  ;;  %v653_v35 = vmul.f32 1.442695, %v640_v29 }
 0x22a   : > { %2348 = vpow2.f32 %v643_v26  ;;  %v655_v36 = vmul.f32 1.442695, %v641_v32  ;;  %v657_v41 = vmul.f32 1.442695, %v642_v34  ;;  %v867_v26 = vpop.permute.xlu2 %866  ;;  %v2602_v19 = vmov 64.0  }
 0x22b   : > { %2350 = vpow2.f32 %v645_v27 }
 0x22c   : > { %2352 = vpow2.f32 %v647_v28  ;;  %888 = vmatpush.bf16.msra.mxu2 %v869_v22  ;;  %v2220_v22 = vld [vmem:[#allocation7 + $0x58] sm:$0xff] }
 0x22d   : > { %2354 = vpow2.f32 %v649_v30  ;;  %966 = vmatpush.bf16.msrb.mxu3 %v2220_v22 }
 0x22e   : > { %2356 = vpow2.f32 %v651_v33 }
 0x22f   : > { %2358 = vpow2.f32 %v653_v35  ;;  %v865_v30 = vpop.permute.xlu0 %864 }
 0x230   : > { %v2349_v37 = vpop.eup %2348  ;;  %2360 = vpow2.f32 %v655_v36  ;;  %v756_v23 = vpop.f32.mrf.mxu0  ;;  %889 = vmatpush.bf16.msra.mxu2 %v867_v26  ;;  %v2218_v26 = vld [vmem:[#allocation7 + $0x48] sm:$0xff] }
 0x231   : > { %v2351_v38 = vpop.eup %2350  ;;  %v659_v42 = vsel %vm619_vm1, %v2349_v37, 0.0  ;;  %2362 = vpow2.f32 %v657_v41  ;;  %v757_v36 = vadd.f32 %v2837_v40, %v756_v23  ;;  %v2219_v23 = vld [vmem:[#allocation7 + $0x50] sm:$0xff] }
 0x232   : > { %v2353_v43 = vpop.eup %2352  ;;  %v660_v44 = vsel %vm619_vm1, %v2351_v38, 0.0  ;;  %967 = vmatpush.bf16.msrb.mxu3 %v2219_v23 }
 0x233   : > { %v2355_v45 = vpop.eup %2354  ;;  %v661_v46 = vadd.f32 %v660_v44, %v659_v42  ;;  %v662_v47 = vsel %vm619_vm1, %v2353_v43, 0.0 }
 0x234   : > { %v2357_v48 = vpop.eup %2356  ;;  %v664_v50 = vsel %vm619_vm1, %v2355_v45, 0.0  ;;  %890 = vmatpush.bf16.msra.mxu2 %v865_v30 }
 0x235   : > { %v663_v49 = vadd.f32 %v662_v47, %v661_v46  ;;  %v2359_v51 = vpop.eup %2358  ;;  %v666_v53 = vsel %vm619_vm1, %v2357_v48, 0.0 }
 0x236   : > { %v2361_v54 = vpop.eup %2360  ;;  %v668_v56 = vsel %vm619_vm1, %v2359_v51, 0.0  ;;  %968 = vmatpush.bf16.msrb.mxu3 %v2218_v26  ;;  %v2254_v26 = vld [vmem:[#allocation7 + $0x170] sm:$0xff] }
 0x237   : > { %v665_v52 = vadd.f32 %v664_v50, %v663_v49  ;;  %v2363_v57 = vpop.eup %2362  ;;  %v670_v59 = vsel %vm619_vm1, %v2361_v54, 0.0 }
 0x238   : > { %v672_v61 = vsel %vm619_vm1, %v2363_v57, 0.0  ;;  %v759_v25 = vpop.f32.mrf.mxu0 }
 0x239   : > { %v667_v55 = vadd.f32 %v666_v53, %v665_v52  ;;  %v760_v41 = vadd.f32 %v2837_v40, %v759_v25 }
 0x23b   : > { %v669_v58 = vadd.f32 %v668_v56, %v667_v55 }
 0x23d   : > { %v671_v60 = vadd.f32 %v670_v59, %v669_v58 }
 0x23f   : > { %v673_v62 = vadd.f32 %v672_v61, %v671_v60 }
 0x240   : > { %v761_v28 = vpop.f32.mrf.mxu0 }
 0x241   : > { %2364 = vrcp.f32 %v673_v62  ;;  %v685_v2 = vand.u32 2147483648, %v673_v62  ;;  %v683_v5 = vand.u32 2147483647, %v673_v62  ;;  %vm679_vm3 = vweird.f32 %v673_v62 }
 0x242   : > { %v762_v44 = vadd.f32 %v2837_v40, %v761_v28  ;;  %2366 = vrcp.f32 %v2602_v19 }
 0x243   : > { %v686_v7 = vor.u32 1.1754944e-38, %v685_v2  ;;  %vm684_vm5 = vcmp.eq.f32.partialorder %v683_v5, 8.507059e+37 }
 0x247   : > { %v2365_v63 = vpop.eup %2364 }
 0x248   : > { %v675_v0 = vmul.f32 %v2365_v63, %v673_v62  ;;  %vm680_vm2 = vweird.f32 %v2365_v63  ;;  %v764_v32 = vpop.f32.mrf.mxu0 }
 0x249   : > { %vm681_vm4 = vmor %vm679_vm3, %vm680_vm2  ;;  %v765_v47 = vadd.f32 %v2837_v40, %v764_v32 }
 0x24a   : > { %v676_v1 = vsub.f32 1.0, %v675_v0 }
 0x24c   : > { %v677_v3 = vmul.f32 %v2365_v63, %v676_v1 }
 0x24e   : > { %v678_v6 = vadd.f32 %v2365_v63, %v677_v3 }
 0x250   : > { %v682_v8 = vsel %vm681_vm4, %v2365_v63, %v678_v6  ;;  %v766_v34 = vpop.f32.mrf.mxu0 }
 0x251   : > { %v687_v9 = vsel %vm684_vm5, %v686_v7, %v682_v8  ;;  %v767_v50 = vadd.f32 %v2837_v40, %v766_v34 }
 0x252   : > { %v688_v10 = vmul.f32 %v2349_v37, %v687_v9  ;;  %v689_v11 = vmul.f32 %v2351_v38, %v687_v9  ;;  %v690_v12 = vmul.f32 %v2353_v43, %v687_v9  ;;  %v691_v13 = vmul.f32 %v2355_v45, %v687_v9 }
 0x253   : > { %v692_v14 = vmul.f32 %v2357_v48, %v687_v9  ;;  %v693_v16 = vmul.f32 %v2359_v51, %v687_v9  ;;  %v694_v17 = vmul.f32 %v2361_v54, %v687_v9  ;;  %v695_v18 = vmul.f32 %v2363_v57, %v687_v9 }
 0x254   : > { %2023 = vmatmul.msk.f32.vlgmr.msrb.gmra.mxu1 %vm619_vm1, %v688_v10  ;;  %v755_v38 = vadd.f32 %v2837_v40, %v754_v21  ;;  %v2338_v21 = vld [vmem:[#allocation8 + $0x2] ss:$0 sm:$0xff] }
 0x255   : > { %929 = vrot.lane.b32.xlu1 %v2338_v21, %s2600_s25 }
 0x258   : > { %v769_v43 = vpop.f32.mrf.mxu0 }
 0x259   : > { %v770_v56 = vadd.f32 %v2837_v40, %v769_v43 }
 0x25c   : > { %2024 = vmatmul.msk.f32.gmra.mxu1 %vm619_vm1, %v689_v11 }
 0x260   : > { %v771_v62 = vpop.f32.mrf.mxu0 }
 0x261   : > { %v772_v2 = vadd.f32 %v2837_v40, %v771_v62  ;;  %v2339_v62 = vld [vmem:[#allocation8 + $0x4] ss:$0 sm:$0xff] }
 0x264   : > { %2025 = vmatmul.msk.f32.gmra.mxu1 %vm619_vm1, %v690_v12 }
 0x26c   : > { %2026 = vmatmul.msk.f32.gmra.mxu1 %vm619_vm1, %v691_v13  ;;  %v878_v13 = vpop.permute.xlu1 %877 }
 0x274   : > { %2027 = vmatmul.msk.f32.gmra.mxu1 %vm619_vm1, %v692_v14 }
 0x27c   : > { %2028 = vmatmul.msk.f32.gmra.mxu1 %vm619_vm1, %v693_v16 }
 0x284   : > { %2029 = vmatmul.msk.f32.gmra.mxu1 %vm619_vm1, %v694_v17 }
 0x28c   : > { %2030 = vmatmul.msk.f32.gmra.mxu1 %vm619_vm1, %v695_v18 }
 0x2d1   : > { %v815_v24 = vpop.f32.mrf.mxu1 }
 0x2d2   : > { %v839_v45 = vmul.f32 %v815_v24, %v755_v38  ;;  %v2367_v24 = vpop.eup %2366 }
 0x2d3   : > { %v901_v25 = vmul.f32 64.0, %v2367_v24  ;;  %vm905_vm6 = vweird.f32 %v2367_v24 }
 0x2d4   : > { %v847_v51 = vsel %vm386_vm0, %v839_v45, 0.0  ;;  %v2225_v45 = vld [vmem:[#allocation7 + $0x80] sm:$0xff] }
 0x2d9   : > { %v818_v27 = vpop.f32.mrf.mxu1 }
 0x2da   : > { %v840_v42 = vmul.f32 %v818_v27, %v757_v36  ;;  %v902_v27 = vsub.f32 1.0, %v901_v25  ;;  %v2217_v36 = vld [vmem:[#allocation7 + $0x40] sm:$0xff] }
 0x2db   : > { %969 = vmatpush.bf16.msrb.mxu3 %v2217_v36  ;;  %v2256_v25 = vld [vmem:[#allocation7 + $0x180] sm:$0xff] }
 0x2dc   : > { %v848_v48 = vsel %vm386_vm0, %v840_v42, 0.0  ;;  %v903_v28 = vmul.f32 %v2367_v24, %v902_v27  ;;  %v2227_v42 = vld [vmem:[#allocation7 + $0x90] sm:$0xff] }
 0x2dd   : > { %v849_v54 = vadd.f32 %v848_v48, %v847_v51  ;;  %v2224_v48 = vld [vmem:[#allocation7 + $0x78] sm:$0xff]  ;;  %v2223_v51 = vld [vmem:[#allocation7 + $0x70] sm:$0xff] }
 0x2e1   : > { %v821_v29 = vpop.f32.mrf.mxu1 }
 0x2e2   : > { %v841_v46 = vmul.f32 %v821_v29, %v760_v41 }
 0x2e4   : > { %v850_v52 = vsel %vm386_vm0, %v841_v46, 0.0 }
 0x2e5   : > { %v851_v59 = vadd.f32 %v850_v52, %v849_v54  ;;  %v2222_v54 = vld [vmem:[#allocation7 + $0x68] sm:$0xff] }
 0x2e9   : > { %v824_v33 = vpop.f32.mrf.mxu1 }
 0x2ea   : > { %v842_v49 = vmul.f32 %v824_v33, %v762_v44  ;;  %v2226_v44 = vld [vmem:[#allocation7 + $0x88] sm:$0xff] }
 0x2ec   : > { %v852_v57 = vsel %vm386_vm0, %v842_v49, 0.0 }
 0x2ed   : > { %v853_v63 = vadd.f32 %v852_v57, %v851_v59  ;;  %v930_v57 = vpop.permute.xlu1 %929  ;;  %v2221_v59 = vld [vmem:[#allocation7 + $0x60] sm:$0xff] }
 0x2f1   : > { %v827_v35 = vpop.f32.mrf.mxu1 }
 0x2f2   : > { %v843_v53 = vmul.f32 %v827_v35, %v765_v47 }
 0x2f4   : > { %v854_v60 = vsel %vm386_vm0, %v843_v53, 0.0 }
 0x2f5   : > { %v855_v1 = vadd.f32 %v854_v60, %v853_v63 }
 0x2f9   : > { %v830_v37 = vpop.f32.mrf.mxu1 }
 0x2fa   : > { %v844_v58 = vmul.f32 %v830_v37, %v767_v50  ;;  %v2228_v37 = vld [vmem:[#allocation7 + $0x98] sm:$0xff] }
 0x2fb   : > { %1026 = vmatpush.bf16.msrb.mxu0 %v2228_v37 }
 0x2fc   : > { %v856_v0 = vsel %vm386_vm0, %v844_v58, 0.0 }
 0x2fd   : > { %v857_v5 = vadd.f32 %v856_v0, %v855_v1 }
 0x2ff   : > { %1027 = vmatpush.bf16.msrb.mxu0 %v2227_v42 }
 0x301   : > { %v833_v55 = vpop.f32.mrf.mxu1 }
 0x302   : > { %v845_v61 = vmul.f32 %v833_v55, %v770_v56 }
 0x303   : > { %1028 = vmatpush.bf16.msrb.mxu0 %v2226_v44 }
 0x304   : > { %v858_v3 = vsel %vm386_vm0, %v845_v61, 0.0 }
 0x305   : > { %v859_v8 = vadd.f32 %v858_v3, %v857_v5  ;;  %v2236_v5 = vld [vmem:[#allocation7 + $0xe0] sm:$0xff] }
 0x306   : > { %1158 = vmatpush.bf16.msrb.mxu2 %v2236_v5 }
 0x307   : > { %1029 = vmatpush.bf16.msrb.mxu0 %v2225_v45 }
 0x309   : > { %v836_v6 = vpop.f32.mrf.mxu1 }
 0x30a   : > { %v846_v7 = vmul.f32 %v836_v6, %v772_v2  ;;  %v2340_v6 = vld [vmem:[#allocation8 + $0x5] ss:$0 sm:$0xff] }
 0x30b   : > { %1030 = vmatpush.bf16.msrb.mxu0 %v2224_v48 }
 0x30c   : > { %v860_v9 = vsel %vm386_vm0, %v846_v7, 0.0 }
 0x30d   : > { %v861_v10 = vadd.f32 %v860_v9, %v859_v8 }
 0x30f   : > { %v862_v11 = vmax.f32 %v861_v10, 0.0  ;;  %1031 = vmatpush.bf16.msrb.mxu0 %v2223_v51  ;;  %v2240_v51 = vld [vmem:[#allocation7 + $0x100] sm:$0xff] }
 0x310   : > { %1500 = vmatpush.bf16.msra.mxu1 %v2240_v51 }
 0x311   : > { %v863_v12 = vpack.c.bf16 %v862_v11, %v862_v11 }
 0x313   : > { %2031 = vmatmul.msk.bf16.vlgmr.msra.gmra.mxu2 %vm386_vm0, %v863_v12  ;;  %1032 = vmatpush.bf16.msrb.mxu0 %v2222_v54  ;;  %v2235_v12 = vld [vmem:[#allocation7 + $0xd8] sm:$0xff] }
 0x314   : > { %1159 = vmatpush.bf16.msrb.mxu2 %v2235_v12 }
 0x317   : > { %1033 = vmatpush.bf16.msrb.mxu0 %v2221_v59 }
 0x396   : > { %v892_v14 = vpop.f32.mrf.mxu2 }
 0x397   : > { %v893_v16 = vadd.f32 %v892_v14, %v878_v13  ;;  %v2234_v13 = vld [vmem:[#allocation7 + $0xd0] sm:$0xff] }
 0x398   : > { %v2341_v14 = vld [vmem:[#allocation8 + $0x3] ss:$0 sm:$0xff]  ;;  %1160 = vmatpush.bf16.msrb.mxu2 %v2234_v13 }
 0x399   : > { %v896_v17 = vadd.f32 %v893_v16, %v2787_v4  ;;  %v904_v4 = vadd.f32 %v2367_v24, %v903_v28  ;;  %v2233_v16 = vld [vmem:[#allocation7 + $0xc8] sm:$0xff] }
 0x39b   : > { %v897_v40 = vsel %vm386_vm0, %v896_v17, 0.0  ;;  %v2885_v29 = vsel %vm905_vm6, %v2367_v24, %v904_v4 }
 0x39c   : > { %898 = vadd.xlane.f32.xlu2 %v897_v40  ;;  %1161 = vmatpush.bf16.msrb.mxu2 %v2233_v16 }
 0x39e   : > { %v894_v18 = vpop.f32.mrf.mxu2 }
 0x3a0   : > { %1346 = vmatpush.bf16.msra.mxu2 %v2256_v25 }
 0x3b4   : > { %1174 = vrot.lane.b32.xlu2 %v2236_v5, %s2600_s25 }
 0x40f   : > { %v899_v30 = vpop.xlane.xlu2 %898 }
 0x410   : > { %v907_v32 = vmul.f32 %v2885_v29, %v899_v30  ;;  %v2902_v30 = vld [vmem:[#allocation8 + $0x8] ss:$0 sm:$0xff] }
 0x412   : > { %v908_v33 = vsub.f32 %v896_v17, %v907_v32 }
 0x414   : > { %v909_v34 = vmul.f32 %v908_v33, %v908_v33 }
 0x416   : > { %v910_v35 = vsel %vm386_vm0, %v909_v34, 0.0 }
 0x417   : > { %911 = vadd.xlane.f32.xlu0 %v910_v35  ;;  %v1175_v40 = vpop.permute.xlu2 %1174  ;;  %v2255_v35 = vld [vmem:[#allocation7 + $0x178] sm:$0xff] }
 0x418   : > { %1188 = vmatpush.bf16.msra.mxu3 %v1175_v40  ;;  %1347 = vmatpush.bf16.msra.mxu2 %v2255_v35 }
 0x41c   : > { %1348 = vmatpush.bf16.msra.mxu2 %v2254_v26 }
 0x42b   : > { %1172 = vrot.lane.b32.xlu0 %v2235_v12, %s2600_s25 }
 0x433   : > { %1065 = vrot.lane.b32.xlu0 %v2341_v14, %s2600_s25 }
 0x43b   : > { %1279 = vrot.lane.b32.xlu0 %v2256_v25, %s2601_s19 }
 0x443   : > { %1181 = vrot.lane.b32.xlu0 %v2902_v30, %s2600_s25 }
 0x48a   : > { %v912_v38 = vpop.xlane.xlu0 %911 }
 0x48b   : > { %v913_v41 = vmul.f32 %v912_v38, %v2885_v29 }
 0x48d   : > { %v914_v43 = vadd.f32 1e-05, %v913_v41 }
 0x48f   : > { %2368 = vrsqrt.f32 %v914_v43  ;;  %vm921_vm8 = vweird.f32 %v914_v43 }
 0x495   : > { %v2369_v46 = vpop.eup %2368 }
 0x496   : > { %v916_v47 = vmul.f32 %v2369_v46, %v914_v43  ;;  %vm922_vm7 = vweird.f32 %v2369_v46 }
 0x497   : > { %vm923_vm9 = vmor %vm921_vm8, %vm922_vm7 }
 0x498   : > { %v917_v49 = vmul.f32 %v2369_v46, %v916_v47 }
 0x49a   : > { %v918_v50 = vmul.f32 0.5, %v917_v49 }
 0x49c   : > { %v919_v52 = vsub.f32 1.5, %v918_v50 }
 0x49d   : > { %v1173_v23 = vpop.permute.xlu0 %1172 }
 0x49e   : > { %v920_v53 = vmul.f32 %v2369_v46, %v919_v52  ;;  %1189 = vmatpush.bf16.msra.mxu3 %v1173_v23  ;;  %v2239_v52 = vld [vmem:[#allocation7 + $0xf8] sm:$0xff] }
 0x49f   : > { %1619 = vrot.lane.b32.xlu0 %v2239_v52, %s2600_s25  ;;  %1501 = vmatpush.bf16.msra.mxu1 %v2239_v52 }
 0x4a0   : > { %v924_v55 = vsel %vm923_vm9, %v2369_v46, %v920_v53  ;;  %v2237_v53 = vld [vmem:[#allocation7 + $0xe8] sm:$0xff] }
 0x4a1   : > { %v925_v56 = vmul.f32 %v924_v55, %v908_v33 }
 0x4a3   : > { %v927_v58 = vmul.f32 %v2338_v21, %v925_v56 }
 0x4a5   : > { %v932_v60 = vadd.f32 %v930_v57, %v927_v58  ;;  %v1066_v44 = vpop.permute.xlu0 %1065 }
 0x4a7   : > { %v933_v61 = vpack.c.bf16 %v932_v60, %v932_v60 }
 0x4a9   : > { %2048 = vmatmul.msk.bf16.vlgmr.msrb.gmra.mxu3 %vm386_vm0, %v933_v61 }
 0x4ad   : > { %v1280_v48 = vpop.permute.xlu0 %1279 }
 0x4ae   : > { %1301 = vmatpush.bf16.msra.mxu0 %v1280_v48 }
 0x4b5   : > { %v1182_v54 = vpop.permute.xlu0 %1181 }
 0x52c   : > { %v971_v63 = vpop.f32.mrf.mxu3 }
 0x52d   : > { %v972_v0 = vadd.f32 %v2339_v62, %v971_v63 }
 0x52f   : > { %v975_v1 = vmax.f32 %v972_v0, 0.0 }
 0x531   : > { %v976_v2 = vpack.c.bf16 %v975_v1, %v975_v1 }
 0x533   : > { %1034 = vmatmul.bf16.vlgmr.msrb.gmra.mxu0 %v976_v2 }
 0x534   : > { %v973_v3 = vpop.f32.mrf.mxu3 }
 0x5b0   : > { %v1035_v7 = vpop.f32.mrf.mxu0 }
 0x5b1   : > { %v1036_v8 = vadd.f32 %v2340_v6, %v1035_v7 }
 0x5b3   : > { %v1039_v9 = vadd.f32 %v1036_v8, %v932_v60 }
 0x5b5   : > { %v1040_v10 = vsel %vm386_vm0, %v1039_v9, 0.0 }
 0x5b6   : > { %1041 = vadd.xlane.f32.xlu1 %v1040_v10 }
 0x5b8   : > { %v1037_v11 = vpop.f32.mrf.mxu0 }
 0x5cf   : > { %1170 = vrot.lane.b32.xlu1 %v2234_v13, %s2600_s25 }
 0x5d7   : > { %1275 = vrot.lane.b32.xlu1 %v2254_v26, %s2601_s19 }
 0x5df   : > { %1621 = vrot.lane.b32.xlu1 %v2240_v51, %s2600_s25 }
 0x5e7   : > { %1615 = vrot.lane.b32.xlu1 %v2237_v53, %s2600_s25 }
 0x629   : > { %v1042_v17 = vpop.xlane.xlu1 %1041 }
 0x62a   : > { %v1043_v18 = vmul.f32 %v1042_v17, %v2885_v29 }
 0x62c   : > { %v1044_v19 = vsub.f32 %v1039_v9, %v1043_v18 }
 0x62e   : > { %v1045_v21 = vmul.f32 %v1044_v19, %v1044_v19 }
 0x630   : > { %v1046_v22 = vsel %vm386_vm0, %v1045_v21, 0.0 }
 0x631   : > { %1047 = vadd.xlane.f32.xlu2 %v1046_v22 }
 0x641   : > { %v1171_v24 = vpop.permute.xlu1 %1170 }
 0x642   : > { %1190 = vmatpush.bf16.msra.mxu3 %v1171_v24 }
 0x649   : > { %1168 = vrot.lane.b32.xlu2 %v2233_v16, %s2600_s25 }
 0x651   : > { %1277 = vrot.lane.b32.xlu2 %v2255_v35, %s2601_s19 }
 0x6a4   : > { %v1048_v27 = vpop.xlane.xlu2 %1047 }
 0x6a5   : > { %v1049_v28 = vmul.f32 %v1048_v27, %v2885_v29 }
 0x6a7   : > { %v1050_v4 = vadd.f32 1e-05, %v1049_v28 }
 0x6a9   : > { %2370 = vrsqrt.f32 %v1050_v4  ;;  %vm1057_vm11 = vweird.f32 %v1050_v4 }
 0x6ac   : > { %v1169_v32 = vpop.permute.xlu2 %1168 }
 0x6ad   : > { %1191 = vmatpush.bf16.msra.mxu3 %v1169_v32 }
 0x6af   : > { %v2371_v33 = vpop.eup %2370 }
 0x6b0   : > { %v1052_v34 = vmul.f32 %v2371_v33, %v1050_v4  ;;  %2098 = vmatmul.msk.bf16.vlgmr.msra.gmra.mxu3 %vm386_vm0, %v2797_v15  ;;  %vm1058_vm10 = vweird.f32 %v2371_v33  ;;  %v2253_v15 = vld [vmem:[#allocation7 + $0x168] sm:$0xff] }
 0x6b1   : > { %vm1059_vm12 = vmor %vm1057_vm11, %vm1058_vm10  ;;  %1273 = vrot.lane.b32.xlu2 %v2253_v15, %s2601_s19  ;;  %1349 = vmatpush.bf16.msra.mxu2 %v2253_v15 }
 0x6b2   : > { %v1053_v36 = vmul.f32 %v2371_v33, %v1052_v34 }
 0x6b4   : > { %v1054_v37 = vmul.f32 0.5, %v1053_v36  ;;  %v1278_v49 = vpop.permute.xlu2 %1277 }
 0x6b5   : > { %1302 = vmatpush.bf16.msra.mxu0 %v1278_v49 }
 0x6b6   : > { %v1055_v38 = vsub.f32 1.5, %v1054_v37 }
 0x6b8   : > { %v1056_v41 = vmul.f32 %v2371_v33, %v1055_v38 }
 0x6ba   : > { %v1060_v42 = vsel %vm1059_vm12, %v2371_v33, %v1056_v41 }
 0x6bb   : > { %v1061_v43 = vmul.f32 %v1060_v42, %v1044_v19 }
 0x6bd   : > { %v1063_v45 = vmul.f32 %v2341_v14, %v1061_v43 }
 0x6bf   : > { %v2909_v46 = vadd.f32 %v1066_v44, %v1063_v45 }
 0x6c0   : > { %2099 = vmatmul.msk.bf16.gmra.mxu3 %vm386_vm0, %v2805_v20  ;;  %v1276_v20 = vpop.permute.xlu1 %1275 }
 0x6c1   : > { %v1125_v47 = vpack.c.bf16 %v2909_v46, %v2909_v46  ;;  %1303 = vmatpush.bf16.msra.mxu0 %v1276_v20 }
 0x6c3   : > { %2097 = vmatmul.msk.bf16.vlgmr.msrb.gmra.mxu2 %vm386_vm0, %v1125_v47 }
 0x6d0   : > { %2100 = vmatmul.msk.bf16.gmra.mxu3 %vm386_vm0, %v2812_v31  ;;  %v2238_v31 = vld [vmem:[#allocation7 + $0xf0] sm:$0xff] }
 0x6d1   : > { %1502 = vmatpush.bf16.msra.mxu1 %v2238_v31  ;;  %1617 = vrot.lane.b32.xlu2 %v2238_v31, %s2600_s25 }
 0x6d5   : > { %1503 = vmatpush.bf16.msra.mxu1 %v2237_v53 }
 0x6e0   : > { %2101 = vmatmul.msk.bf16.gmra.mxu3 %vm386_vm0, %v2819_v39 }
 0x70b   : > { %v1274_v50 = vpop.permute.xlu2 %1273 }
 0x70c   : > { %1304 = vmatpush.bf16.msra.mxu0 %v1274_v50 }
 0x733   : > { %v1193_v39 = vpop.f32.mrf.mxu3 }
 0x734   : > { %v1194_v55 = vadd.f32 %v1193_v39, %v1182_v54 }
 0x736   : > { %v1213_v58 = vmax.f32 %v1194_v55, 0.0  ;;  %v2938_v55 = vld [vmem:[#allocation8 + $0x9] ss:$0 sm:$0xff] }
 0x737   : > { %1628 = vrot.lane.b32.xlu0 %v2938_v55, %s2600_s25 }
 0x73b   : > { %v1195_v56 = vpop.f32.mrf.mxu3 }
 0x73c   : > { %v1196_v57 = vadd.f32 %v1195_v56, %v1182_v54 }
 0x73e   : > { %v1214_v59 = vmax.f32 %v1196_v57, 0.0 }
 0x740   : > { %v1249_v60 = vpack.c.bf16 %v1214_v59, %v1213_v58 }
 0x742   : > { %2118 = vmatmul.msk.bf16.vlgmr.msra.gmra.mxu0 %vm386_vm0, %v1249_v60 }
 0x743   : > { %v1198_v61 = vpop.f32.mrf.mxu3 }
 0x744   : > { %v1199_v0 = vadd.f32 %v1198_v61, %v1182_v54  ;;  %v1117_v61 = vld [vmem:[#allocation7 + $0x188] sm:$0xf] }
 0x746   : > { %v1163_v62 = vpop.f32.mrf.mxu2  ;;  %v1215_v6 = vmax.f32 %v1199_v0, 0.0 }
 0x747   : > { %v1164_v63 = vadd.f32 %v2902_v30, %v1163_v62  ;;  %v1118_v62 = vunpack.c.l.bf16 %v1117_v61 }
 0x749   : > { %v1167_v1 = vmax.f32 %v1164_v63, 0.0  ;;  %1564 = vmatpush.msrb.mxu3 %v1118_v62 }
 0x74b   : > { %v1200_v2 = vpop.f32.mrf.mxu3  ;;  %v1222_v3 = vrot.slane %v1167_v1, 1  ;;  %v1229_v5 = vperm.slane %v1167_v1, 0  ;;  %v1224_v40 = vrot.slane %v1167_v1, 3  ;;  %v1223_v18 = vrot.slane %v1167_v1, 2 }
 0x74c   : > { %v1201_v7 = vadd.f32 %v1200_v2, %v1182_v54  ;;  %v1225_v34 = vrot.slane %v1167_v1, 4  ;;  %v1226_v35 = vrot.slane %v1167_v1, 5  ;;  %v1227_v20 = vrot.slane %v1167_v1, 6 }
 0x74d   : > { %v1230_v8 = vperm.slane %v1222_v3, 0  ;;  %v1447_v12 = vmul.f32 %v1229_v5, %v1213_v58  ;;  %v1232_v19 = vperm.slane %v1224_v40, 0  ;;  %v1231_v21 = vperm.slane %v1223_v18, 0 }
 0x74e   : > { %v1216_v9 = vmax.f32 %v1201_v7, 0.0  ;;  %v1165_v10 = vpop.f32.mrf.mxu2  ;;  %v1233_v37 = vperm.slane %v1225_v34, 0  ;;  %v1234_v38 = vperm.slane %v1226_v35, 0  ;;  %v1228_v50 = vrot.slane %v1167_v1, 7 }
 0x74f   : > { %v1245_v11 = vpack.c.bf16 %v1230_v8, %v1229_v5  ;;  %v1448_v13 = vmul.f32 %v1230_v8, %v1214_v59  ;;  %v1449_v26 = vmul.f32 %v1231_v21, %v1215_v6  ;;  %v1246_v4 = vpack.c.bf16 %v1232_v19, %v1231_v21 }
 0x750   : > { %v1250_v14 = vpack.c.bf16 %v1216_v9, %v1215_v6  ;;  %v1450_v25 = vmul.f32 %v1232_v19, %v1216_v9  ;;  %v1247_v47 = vpack.c.bf16 %v1234_v38, %v1233_v37  ;;  %v1235_v51 = vperm.slane %v1227_v20, 0 }
 0x751   : > { %2122 = vmatmul.msk.bf16.vlgmr.msra.gmra.mxu2 %vm386_vm0, %v1245_v11  ;;  %v1455_v16 = vpack.c.bf16 %v1448_v13, %v1447_v12  ;;  %v1236_v52 = vperm.slane %v1228_v50, 0 }
 0x752   : > { %2119 = vmatmul.msk.bf16.gmra.mxu0 %vm386_vm0, %v1250_v14  ;;  %v1456_v32 = vpack.c.bf16 %v1450_v25, %v1449_v26 }
 0x753   : > { %v1203_v17 = vpop.f32.mrf.mxu3  ;;  %2142 = vmatmul.msk.bf16.vlgmr.msra.gmra.mxu1 %vm386_vm0, %v1455_v16  ;;  %v1248_v39 = vpack.c.bf16 %v1236_v52, %v1235_v51 }
 0x754   : > { %v1204_v22 = vadd.f32 %v1203_v17, %v1182_v54 }
 0x756   : > { %v1217_v27 = vmax.f32 %v1204_v22, 0.0 }
 0x758   : > { %v1451_v15 = vmul.f32 %v1233_v37, %v1217_v27 }
 0x75b   : > { %v1205_v23 = vpop.f32.mrf.mxu3 }
 0x75c   : > { %v1206_v24 = vadd.f32 %v1205_v23, %v1182_v54 }
 0x75e   : > { %v1218_v28 = vmax.f32 %v1206_v24, 0.0 }
 0x760   : > { %v1251_v30 = vpack.c.bf16 %v1218_v28, %v1217_v27  ;;  %v1452_v43 = vmul.f32 %v1234_v38, %v1218_v28 }
 0x761   : > { %2123 = vmatmul.msk.bf16.gmra.mxu2 %vm386_vm0, %v1246_v4 }
 0x762   : > { %2120 = vmatmul.msk.bf16.gmra.mxu0 %vm386_vm0, %v1251_v30  ;;  %v1457_v49 = vpack.c.bf16 %v1452_v43, %v1451_v15 }
 0x763   : > { %v1208_v33 = vpop.f32.mrf.mxu3  ;;  %2143 = vmatmul.msk.bf16.gmra.mxu1 %vm386_vm0, %v1456_v32 }
 0x764   : > { %v1209_v36 = vadd.f32 %v1208_v33, %v1182_v54 }
 0x766   : > { %v1219_v44 = vmax.f32 %v1209_v36, 0.0 }
 0x768   : > { %v1453_v53 = vmul.f32 %v1235_v51, %v1219_v44 }
 0x76b   : > { %v1210_v41 = vpop.f32.mrf.mxu3 }
 0x76c   : > { %v1211_v42 = vadd.f32 %v1210_v41, %v1182_v54 }
 0x76e   : > { %v1220_v45 = vmax.f32 %v1211_v42, 0.0 }
 0x770   : > { %v1252_v48 = vpack.c.bf16 %v1220_v45, %v1219_v44  ;;  %v1454_v31 = vmul.f32 %v1236_v52, %v1220_v45 }
 0x771   : > { %2124 = vmatmul.msk.bf16.gmra.mxu2 %vm386_vm0, %v1247_v47 }
 0x772   : > { %2121 = vmatmul.msk.bf16.gmra.mxu0 %vm386_vm0, %v1252_v48  ;;  %v1458_v54 = vpack.c.bf16 %v1454_v31, %v1453_v53 }
 0x773   : > { %2144 = vmatmul.msk.bf16.gmra.mxu1 %vm386_vm0, %v1457_v49 }
 0x781   : > { %2125 = vmatmul.msk.bf16.gmra.mxu2 %vm386_vm0, %v1248_v39 }
 0x783   : > { %2145 = vmatmul.msk.bf16.gmra.mxu1 %vm386_vm0, %v1458_v54 }
 0x7bf   : > { %v1306_v56 = vpop.f32.mrf.mxu0 }
 0x7c7   : > { %v1308_v57 = vpop.f32.mrf.mxu0 }
 0x7cf   : > { %v1311_v59 = vpop.f32.mrf.mxu0 }
 0x7d4   : > { %v1351_v58 = vpop.f32.mrf.mxu2 }
 0x7d5   : > { %v1352_v13 = vadd.f32 %v1351_v58, %v1306_v56 }
 0x7d7   : > { %v1313_v63 = vpop.f32.mrf.mxu0  ;;  %v1371_v25 = vsel %vm619_vm1, %v1352_v13, -inf }
 0x7dc   : > { %v1353_v60 = vpop.f32.mrf.mxu2 }
 0x7dd   : > { %v1354_v10 = vadd.f32 %v1353_v60, %v1308_v57 }
 0x7df   : > { %v1316_v2 = vpop.f32.mrf.mxu0  ;;  %v1372_v19 = vsel %vm619_vm1, %v1354_v10, -inf }
 0x7e4   : > { %v1356_v0 = vpop.f32.mrf.mxu2 }
 0x7e5   : > { %v1357_v14 = vadd.f32 %v1356_v0, %v1311_v59 }
 0x7e7   : > { %v1318_v5 = vpop.f32.mrf.mxu0  ;;  %v1373_v26 = vsel %vm619_vm1, %v1357_v14, -inf }
 0x7ec   : > { %v1358_v1 = vpop.f32.mrf.mxu2 }
 0x7ed   : > { %v1359_v16 = vadd.f32 %v1358_v1, %v1313_v63 }
 0x7ef   : > { %v1321_v7 = vpop.f32.mrf.mxu0  ;;  %v1374_v27 = vsel %vm619_vm1, %v1359_v16, -inf }
 0x7f4   : > { %v1361_v3 = vpop.f32.mrf.mxu2 }
 0x7f5   : > { %v1362_v11 = vadd.f32 %v1361_v3, %v1316_v2 }
 0x7f7   : > { %v1323_v40 = vpop.f32.mrf.mxu0  ;;  %v1375_v21 = vsel %vm619_vm1, %v1362_v11, -inf }
 0x7f8   : > { %v1376_v4 = vmax.f32 %v1371_v25, %v1375_v21 }
 0x7fc   : > { %v1363_v6 = vpop.f32.mrf.mxu2 }
 0x7fd   : > { %v1364_v9 = vadd.f32 %v1363_v6, %v1318_v5 }
 0x7ff   : > { %v1377_v17 = vsel %vm619_vm1, %v1364_v9, -inf }
 0x800   : > { %v1378_v24 = vmax.f32 %v1372_v19, %v1377_v17 }
 0x802   : > { %v1383_v33 = vmax.f32 %v1376_v4, %v1378_v24 }
 0x804   : > { %v1366_v8 = vpop.f32.mrf.mxu2 }
 0x805   : > { %v1367_v12 = vadd.f32 %v1366_v8, %v1321_v7 }
 0x807   : > { %v1379_v22 = vsel %vm619_vm1, %v1367_v12, -inf }
 0x808   : > { %v1380_v30 = vmax.f32 %v1373_v26, %v1379_v22 }
 0x80c   : > { %v1368_v18 = vpop.f32.mrf.mxu2 }
 0x80d   : > { %v1369_v23 = vadd.f32 %v1368_v18, %v1323_v40 }
 0x80f   : > { %v1381_v28 = vsel %vm619_vm1, %v1369_v23, -inf }
 0x810   : > { %v1382_v32 = vmax.f32 %v1374_v27, %v1381_v28 }
 0x812   : > { %v1384_v34 = vmax.f32 %v1380_v30, %v1382_v32  ;;  %v1622_v32 = vpop.permute.xlu1 %1621 }
 0x813   : > { %1638 = vmatpush.bf16.msrb.mxu0 %v1622_v32  ;;  %v2242_v32 = vld [vmem:[#allocation7 + $0x110] sm:$0xff] }
 0x814   : > { %v1385_v35 = vmax.f32 %v1383_v33, %v1384_v34  ;;  %v1505_v33 = vpop.f32.mrf.mxu1  ;;  %v1620_v34 = vpop.permute.xlu0 %1619 }
 0x816   : > { %v1386_v36 = vsub.f32 %v1352_v13, %v1385_v35  ;;  %v1387_v37 = vsub.f32 %v1354_v10, %v1385_v35  ;;  %v1388_v38 = vsub.f32 %v1357_v14, %v1385_v35  ;;  %v1389_v41 = vsub.f32 %v1359_v16, %v1385_v35 }
 0x817   : > { %v1390_v42 = vsub.f32 %v1362_v11, %v1385_v35  ;;  %v1391_v15 = vsub.f32 %v1364_v9, %v1385_v35  ;;  %v1392_v48 = vsub.f32 %v1367_v12, %v1385_v35  ;;  %v1393_v20 = vsub.f32 %v1369_v23, %v1385_v35  ;;  %1639 = vmatpush.bf16.msrb.mxu0 %v1620_v34 }
 0x818   : > { %v1394_v43 = vmul.f32 1.442695, %v1386_v36  ;;  %v1396_v44 = vmul.f32 1.442695, %v1387_v37  ;;  %v1398_v45 = vmul.f32 1.442695, %v1388_v38  ;;  %v1618_v38 = vpop.permute.xlu2 %1617 }
 0x819   : > { %v1400_v47 = vmul.f32 1.442695, %v1389_v41  ;;  %v1402_v49 = vmul.f32 1.442695, %v1390_v42  ;;  %v1404_v50 = vmul.f32 1.442695, %v1391_v15 }
 0x81a   : > { %2372 = vpow2.f32 %v1394_v43  ;;  %v1406_v51 = vmul.f32 1.442695, %v1392_v48  ;;  %v1408_v53 = vmul.f32 1.442695, %v1393_v20 }
 0x81b   : > { %2374 = vpow2.f32 %v1396_v44  ;;  %1640 = vmatpush.bf16.msrb.mxu0 %v1618_v38  ;;  %v1616_v44 = vpop.permute.xlu1 %1615  ;;  %v2252_v38 = vld [vmem:[#allocation7 + $0x160] sm:$0xff] }
 0x81c   : > { %2376 = vpow2.f32 %v1398_v45  ;;  %v1507_v35 = vpop.f32.mrf.mxu1 }
 0x81d   : > { %2378 = vpow2.f32 %v1400_v47 }
 0x81e   : > { %2380 = vpow2.f32 %v1402_v49  ;;  %v1508_v49 = vadd.f32 %v2938_v55, %v1507_v35 }
 0x81f   : > { %2382 = vpow2.f32 %v1404_v50  ;;  %1641 = vmatpush.bf16.msrb.mxu0 %v1616_v44  ;;  %v1506_v50 = vadd.f32 %v2938_v55, %v1505_v33 }
 0x820   : > { %v2373_v52 = vpop.eup %2372  ;;  %2384 = vpow2.f32 %v1406_v51 }
 0x821   : > { %v2375_v31 = vpop.eup %2374  ;;  %v1410_v39 = vsel %vm619_vm1, %v2373_v52, 0.0  ;;  %2386 = vpow2.f32 %v1408_v53 }
 0x822   : > { %v2377_v54 = vpop.eup %2376  ;;  %v1411_v56 = vsel %vm619_vm1, %v2375_v31, 0.0 }
 0x823   : > { %v2379_v57 = vpop.eup %2378  ;;  %v1412_v58 = vadd.f32 %v1411_v56, %v1410_v39  ;;  %v1413_v59 = vsel %vm619_vm1, %v2377_v54, 0.0  ;;  %1770 = vmatpush.bf16.msra.mxu0 %v2252_v38 }
 0x824   : > { %v2381_v60 = vpop.eup %2380  ;;  %v1415_v62 = vsel %vm619_vm1, %v2379_v57, 0.0  ;;  %v1510_v37 = vpop.f32.mrf.mxu1 }
 0x825   : > { %v1414_v61 = vadd.f32 %v1413_v59, %v1412_v58  ;;  %v2383_v63 = vpop.eup %2382  ;;  %v1417_v1 = vsel %vm619_vm1, %v2381_v60, 0.0  ;;  %v1511_v51 = vadd.f32 %v2938_v55, %v1510_v37  ;;  %v2241_v37 = vld [vmem:[#allocation7 + $0x108] sm:$0xff] }
 0x826   : > { %v2385_v2 = vpop.eup %2384  ;;  %v1419_v5 = vsel %vm619_vm1, %v2383_v63, 0.0 }
 0x827   : > { %v1416_v0 = vadd.f32 %v1415_v62, %v1414_v61  ;;  %v2387_v6 = vpop.eup %2386  ;;  %v1421_v8 = vsel %vm619_vm1, %v2385_v2, 0.0 }
 0x828   : > { %v1423_v10 = vsel %vm619_vm1, %v2387_v6, 0.0 }
 0x829   : > { %v1418_v3 = vadd.f32 %v1417_v1, %v1416_v0 }
 0x82b   : > { %v1420_v7 = vadd.f32 %v1419_v5, %v1418_v3 }
 0x82c   : > { %v1512_v42 = vpop.f32.mrf.mxu1 }
 0x82d   : > { %v1422_v9 = vadd.f32 %v1421_v8, %v1420_v7  ;;  %v1513_v53 = vadd.f32 %v2938_v55, %v1512_v42 }
 0x82f   : > { %v1424_v11 = vadd.f32 %v1423_v10, %v1422_v9 }
 0x831   : > { %2388 = vrcp.f32 %v1424_v11  ;;  %v1436_v16 = vand.u32 2147483648, %v1424_v11  ;;  %v1434_v40 = vand.u32 2147483647, %v1424_v11  ;;  %vm1430_vm14 = vweird.f32 %v1424_v11 }
 0x833   : > { %v1437_v19 = vor.u32 1.1754944e-38, %v1436_v16  ;;  %vm1435_vm2 = vcmp.eq.f32.partialorder %v1434_v40, 8.507059e+37 }
 0x834   : > { %v1515_v45 = vpop.f32.mrf.mxu1 }
 0x835   : > { %v1516_v56 = vadd.f32 %v2938_v55, %v1515_v45  ;;  %v2250_v45 = vld [vmem:[#allocation7 + $0x150] sm:$0xff] }
 0x837   : > { %v2389_v12 = vpop.eup %2388 }
 0x838   : > { %v1426_v13 = vmul.f32 %v2389_v12, %v1424_v11  ;;  %vm1431_vm13 = vweird.f32 %v2389_v12 }
 0x839   : > { %vm1432_vm15 = vmor %vm1430_vm14, %vm1431_vm13 }
 0x83a   : > { %v1427_v14 = vsub.f32 1.0, %v1426_v13 }
 0x83c   : > { %v1428_v17 = vmul.f32 %v2389_v12, %v1427_v14  ;;  %v1517_v47 = vpop.f32.mrf.mxu1 }
 0x83d   : > { %v1518_v59 = vadd.f32 %v2938_v55, %v1517_v47 }
 0x83e   : > { %v1429_v18 = vadd.f32 %v2389_v12, %v1428_v17 }
 0x840   : > { %v1433_v21 = vsel %vm1432_vm15, %v2389_v12, %v1429_v18 }
 0x841   : > { %v1438_v22 = vsel %vm1435_vm2, %v1437_v19, %v1433_v21 }
 0x842   : > { %v1439_v23 = vmul.f32 %v2373_v52, %v1438_v22  ;;  %v1440_v24 = vmul.f32 %v2375_v31, %v1438_v22  ;;  %v1441_v25 = vmul.f32 %v2377_v54, %v1438_v22  ;;  %v1442_v26 = vmul.f32 %v2379_v57, %v1438_v22 }
 0x843   : > { %v1443_v27 = vmul.f32 %v2381_v60, %v1438_v22  ;;  %v1444_v28 = vmul.f32 %v2383_v63, %v1438_v22  ;;  %v1445_v4 = vmul.f32 %v2385_v2, %v1438_v22  ;;  %v1446_v30 = vmul.f32 %v2387_v6, %v1438_v22 }
 0x844   : > { %2146 = vmatmul.msk.f32.vlgmr.msrb.gmra.mxu3 %vm619_vm1, %v1439_v23  ;;  %v1520_v31 = vpop.f32.mrf.mxu1  ;;  %v1629_v23 = vpop.permute.xlu0 %1628 }
 0x845   : > { %v1521_v1 = vadd.f32 %v2938_v55, %v1520_v31 }
 0x84c   : > { %2147 = vmatmul.msk.f32.gmra.mxu3 %vm619_vm1, %v1440_v24  ;;  %v1522_v8 = vpop.f32.mrf.mxu1 }
 0x84d   : > { %v1523_v12 = vadd.f32 %v2938_v55, %v1522_v8 }
 0x854   : > { %2148 = vmatmul.msk.f32.gmra.mxu3 %vm619_vm1, %v1441_v25 }
 0x85c   : > { %2149 = vmatmul.msk.f32.gmra.mxu3 %vm619_vm1, %v1442_v26 }
 0x864   : > { %2150 = vmatmul.msk.f32.gmra.mxu3 %vm619_vm1, %v1443_v27 }
 0x86c   : > { %2151 = vmatmul.msk.f32.gmra.mxu3 %vm619_vm1, %v1444_v28  ;;  %v2344_v28 = vld [vmem:[#allocation8 + $0xa] ss:$0 sm:$0xff] }
 0x86d   : > { %1673 = vrot.lane.b32.xlu0 %v2344_v28, %s2600_s25 }
 0x874   : > { %2152 = vmatmul.msk.f32.gmra.mxu3 %vm619_vm1, %v1445_v4  ;;  %v2244_v4 = vld [vmem:[#allocation7 + $0x120] sm:$0xff] }
 0x875   : > { %1710 = vmatpush.bf16.msrb.mxu2 %v2244_v4 }
 0x87c   : > { %2153 = vmatmul.msk.f32.gmra.mxu3 %vm619_vm1, %v1446_v30  ;;  %v2243_v30 = vld [vmem:[#allocation7 + $0x118] sm:$0xff] }
 0x87d   : > { %1711 = vmatpush.bf16.msrb.mxu2 %v2243_v30 }
 0x881   : > { %1712 = vmatpush.bf16.msrb.mxu2 %v2242_v32 }
 0x885   : > { %1713 = vmatpush.bf16.msrb.mxu2 %v2241_v37 }
 0x8c7   : > { %v1566_v36 = vpop.f32.mrf.mxu3 }
 0x8c8   : > { %v1590_v39 = vmul.f32 %v1566_v36, %v1506_v50 }
 0x8ca   : > { %v1598_v60 = vsel %vm386_vm0, %v1590_v39, 0.0 }
 0x8cf   : > { %v1569_v41 = vpop.f32.mrf.mxu3 }
 0x8d0   : > { %v1591_v52 = vmul.f32 %v1569_v41, %v1508_v49  ;;  %v2248_v49 = vld [vmem:[#allocation7 + $0x140] sm:$0xff] }
 0x8d2   : > { %v1599_v57 = vsel %vm386_vm0, %v1591_v52, 0.0 }
 0x8d3   : > { %v1600_v63 = vadd.f32 %v1599_v57, %v1598_v60  ;;  %v2245_v60 = vld [vmem:[#allocation7 + $0x128] sm:$0xff] }
 0x8d7   : > { %v1572_v43 = vpop.f32.mrf.mxu3 }
 0x8d8   : > { %v1592_v54 = vmul.f32 %v1572_v43, %v1511_v51  ;;  %v2251_v43 = vld [vmem:[#allocation7 + $0x158] sm:$0xff] }
 0x8d9   : > { %1771 = vmatpush.bf16.msra.mxu0 %v2251_v43  ;;  %v2247_v51 = vld [vmem:[#allocation7 + $0x138] sm:$0xff] }
 0x8da   : > { %v1601_v61 = vsel %vm386_vm0, %v1592_v54, 0.0 }
 0x8db   : > { %v1602_v5 = vadd.f32 %v1601_v61, %v1600_v63  ;;  %v2345_v61 = vld [vmem:[#allocation8 + $0xc] ss:$0 sm:$0xff] }
 0x8dd   : > { %1772 = vmatpush.bf16.msra.mxu0 %v2250_v45 }
 0x8df   : > { %v1575_v15 = vpop.f32.mrf.mxu3  ;;  %v1674_v54 = vpop.permute.xlu0 %1673 }
 0x8e0   : > { %v1593_v58 = vmul.f32 %v1575_v15, %v1513_v53  ;;  %v2249_v15 = vld [vmem:[#allocation7 + $0x148] sm:$0xff] }
 0x8e1   : > { %1773 = vmatpush.bf16.msra.mxu0 %v2249_v15 }
 0x8e2   : > { %v1603_v2 = vsel %vm386_vm0, %v1593_v58, 0.0 }
 0x8e3   : > { %v1604_v9 = vadd.f32 %v1603_v2, %v1602_v5 }
 0x8e5   : > { %1774 = vmatpush.bf16.msra.mxu0 %v2248_v49 }
 0x8e7   : > { %v1578_v48 = vpop.f32.mrf.mxu3 }
 0x8e8   : > { %v1594_v62 = vmul.f32 %v1578_v48, %v1516_v56 }
 0x8e9   : > { %1775 = vmatpush.bf16.msra.mxu0 %v2247_v51 }
 0x8ea   : > { %v1605_v6 = vsel %vm386_vm0, %v1594_v62, 0.0 }
 0x8eb   : > { %v1606_v11 = vadd.f32 %v1605_v6, %v1604_v9 }
 0x8ef   : > { %v1581_v20 = vpop.f32.mrf.mxu3 }
 0x8f0   : > { %v1595_v3 = vmul.f32 %v1581_v20, %v1518_v59  ;;  %v2246_v59 = vld [vmem:[#allocation7 + $0x130] sm:$0xff] }
 0x8f1   : > { %1776 = vmatpush.bf16.msra.mxu0 %v2246_v59 }
 0x8f2   : > { %v1607_v10 = vsel %vm386_vm0, %v1595_v3, 0.0  ;;  %v2346_v3 = vld [vmem:[#allocation8 + $0xd] ss:$0 sm:$0xff] }
 0x8f3   : > { %v1608_v14 = vadd.f32 %v1607_v10, %v1606_v11  ;;  %v2347_v10 = vld [vmem:[#allocation8 + $0xb] ss:$0 sm:$0xff] }
 0x8f5   : > { %1777 = vmatpush.bf16.msra.mxu0 %v2245_v60 }
 0x8f7   : > { %v1584_v0 = vpop.f32.mrf.mxu3 }
 0x8f8   : > { %v1596_v7 = vmul.f32 %v1584_v0, %v1521_v1 }
 0x8fa   : > { %v1609_v13 = vsel %vm386_vm0, %v1596_v7, 0.0 }
 0x8fb   : > { %v1610_v40 = vadd.f32 %v1609_v13, %v1608_v14 }
 0x8ff   : > { %v1587_v16 = vpop.f32.mrf.mxu3 }
 0x900   : > { %v1597_v17 = vmul.f32 %v1587_v16, %v1523_v12 }
 0x902   : > { %v1611_v18 = vsel %vm386_vm0, %v1597_v17, 0.0 }
 0x903   : > { %v1612_v19 = vadd.f32 %v1611_v18, %v1610_v40 }
 0x905   : > { %v1613_v21 = vmax.f32 %v1612_v19, 0.0 }
 0x907   : > { %v1614_v22 = vpack.c.bf16 %v1613_v21, %v1613_v21 }
 0x909   : > { %2154 = vmatmul.msk.bf16.vlgmr.msrb.gmra.mxu0 %vm386_vm0, %v1614_v22 }
 0x986   : > { %v1643_v24 = vpop.f32.mrf.mxu0 }
 0x987   : > { %v1644_v25 = vadd.f32 %v1643_v24, %v1629_v23 }
 0x989   : > { %v1647_v26 = vadd.f32 %v1644_v25, %v2909_v46 }
 0x98b   : > { %v1648_v55 = vsel %vm386_vm0, %v1647_v26, 0.0 }
 0x98c   : > { %1649 = vadd.xlane.f32.xlu2 %v1648_v55 }
 0x98e   : > { %v1645_v27 = vpop.f32.mrf.mxu0 }
 0x9ff   : > { %v1650_v33 = vpop.xlane.xlu2 %1649 }
 0xa00   : > { %v1651_v34 = vmul.f32 %v1650_v33, %v2885_v29 }
 0xa02   : > { %v1652_v35 = vsub.f32 %v1647_v26, %v1651_v34 }
 0xa04   : > { %v1653_v36 = vmul.f32 %v1652_v35, %v1652_v35 }
 0xa06   : > { %v1654_v46 = vsel %vm386_vm0, %v1653_v36, 0.0 }
 0xa07   : > { %1655 = vadd.xlane.f32.xlu1 %v1654_v46 }
 0xa20   : > { %1809 = vrot.lane.b32.xlu1 %v2347_v10, %s2600_s25 }
 0xa7a   : > { %v1656_v41 = vpop.xlane.xlu1 %1655 }
 0xa7b   : > { %v1657_v42 = vmul.f32 %v1656_v41, %v2885_v29 }
 0xa7d   : > { %v1658_v44 = vadd.f32 1e-05, %v1657_v42 }
 0xa7f   : > { %2390 = vrsqrt.f32 %v1658_v44  ;;  %vm1665_vm3 = vweird.f32 %v1658_v44 }
 0xa85   : > { %v2391_v47 = vpop.eup %2390 }
 0xa86   : > { %v1660_v48 = vmul.f32 %v2391_v47, %v1658_v44  ;;  %vm1666_vm1 = vweird.f32 %v2391_v47 }
 0xa87   : > { %vm1667_vm4 = vmor %vm1665_vm3, %vm1666_vm1 }
 0xa88   : > { %v1661_v20 = vmul.f32 %v2391_v47, %v1660_v48 }
 0xa8a   : > { %v1662_v50 = vmul.f32 0.5, %v1661_v20 }
 0xa8c   : > { %v1663_v52 = vsub.f32 1.5, %v1662_v50 }
 0xa8e   : > { %v1664_v31 = vmul.f32 %v2391_v47, %v1663_v52 }
 0xa90   : > { %v1668_v53 = vsel %vm1667_vm4, %v2391_v47, %v1664_v31 }
 0xa91   : > { %v1669_v39 = vmul.f32 %v1668_v53, %v1652_v35 }
 0xa92   : > { %v1810_v55 = vpop.permute.xlu1 %1809 }
 0xa93   : > { %v1671_v56 = vmul.f32 %v2344_v28, %v1669_v39 }
 0xa95   : > { %v1676_v57 = vadd.f32 %v1674_v54, %v1671_v56 }
 0xa97   : > { %v1677_v58 = vpack.c.bf16 %v1676_v57, %v1676_v57 }
 0xa99   : > { %2171 = vmatmul.msk.bf16.vlgmr.msrb.gmra.mxu2 %vm386_vm0, %v1677_v58 }
 0xb1c   : > { %v1715_v62 = vpop.f32.mrf.mxu2 }
 0xb1d   : > { %v1716_v63 = vadd.f32 %v2345_v61, %v1715_v62 }
 0xb1f   : > { %v1719_v0 = vmax.f32 %v1716_v63, 0.0 }
 0xb21   : > { %v1720_v1 = vpack.c.bf16 %v1719_v0, %v1719_v0 }
 0xb23   : > { %1778 = vmatmul.bf16.vlgmr.msra.gmra.mxu0 %v1720_v1 }
 0xb24   : > { %v1717_v2 = vpop.f32.mrf.mxu2 }
 0xba0   : > { %v1779_v5 = vpop.f32.mrf.mxu0 }
 0xba1   : > { %v1780_v6 = vadd.f32 %v2346_v3, %v1779_v5 }
 0xba3   : > { %v1783_v7 = vadd.f32 %v1780_v6, %v1676_v57 }
 0xba5   : > { %v1784_v8 = vsel %vm386_vm0, %v1783_v7, 0.0 }
 0xba6   : > { %1785 = vadd.xlane.f32.xlu0 %v1784_v8 }
 0xba8   : > { %v1781_v9 = vpop.f32.mrf.mxu0 }
 0xc19   : > { %v1786_v11 = vpop.xlane.xlu0 %1785 }
 0xc1a   : > { %v1787_v12 = vmul.f32 %v1786_v11, %v2885_v29 }
 0xc1c   : > { %v1788_v13 = vsub.f32 %v1783_v7, %v1787_v12 }
 0xc1e   : > { %v1789_v14 = vmul.f32 %v1788_v13, %v1788_v13 }
 0xc20   : > { %v1790_v16 = vsel %vm386_vm0, %v1789_v14, 0.0 }
 0xc21   : > { %1791 = vadd.xlane.f32.xlu2 %v1790_v16 }
 0xc94   : > { %v1792_v17 = vpop.xlane.xlu2 %1791 }
 0xc95   : > { %v1793_v40 = vmul.f32 %v1792_v17, %v2885_v29 }
 0xc97   : > { %v1794_v18 = vadd.f32 1e-05, %v1793_v40 }
 0xc99   : > { %2392 = vrsqrt.f32 %v1794_v18  ;;  %vm1801_vm6 = vweird.f32 %v1794_v18 }
 0xc9f   : > { %v2393_v19 = vpop.eup %2392 }
 0xca0   : > { %v1796_v21 = vmul.f32 %v2393_v19, %v1794_v18  ;;  %vm1802_vm5 = vweird.f32 %v2393_v19 }
 0xca1   : > { %vm1803_vm7 = vmor %vm1801_vm6, %vm1802_vm5 }
 0xca2   : > { %v1797_v22 = vmul.f32 %v2393_v19, %v1796_v21 }
 0xca4   : > { %v1798_v23 = vmul.f32 0.5, %v1797_v22 }
 0xca6   : > { %v1799_v24 = vsub.f32 1.5, %v1798_v23 }
 0xca8   : > { %v1800_v25 = vmul.f32 %v2393_v19, %v1799_v24 }
 0xcaa   : > { %v1804_v26 = vsel %vm1803_vm7, %v2393_v19, %v1800_v25 }
 0xcab   : > { %v1805_v29 = vmul.f32 %v1804_v26, %v1788_v13 }
 0xcad   : > { %v1807_v27 = vmul.f32 %v2347_v10, %v1805_v29 }
 0xcaf   : > { %v1812_v28 = vadd.f32 %v1810_v55, %v1807_v27 }
 0xcb1   : > { %1813 = vst.msk [vmem:[%s289_s5] sm:$0xff] %vm386_vm0, %v1812_v28 }
 0xcb2   : > { %2541 = shalt.err (!%p2538_p8)
}
 0xcb3   : > { %2269 = dma.vmem_to_hbm [thread:$0]  (%p2701_p2), %s1828_s6, 128, %s1830_s11, %s1815_s22  }
 0xcb4 PF: > { %p2294_p9 = scmp.ge.s32.totalorder %s2592_s18, 2  ;;  %s1841_s28 = sand.u32 1, %s2580_s15  }
 0xcb5   : > { %s1842_s13 = scalar_lea.sflag [#allocation4], %s1841_s28 }
 0xcb6   : > { %p2286_p10 = pnand %p2294_p9, %p2705_p4 }
 0xcb8   : > { %p2287_p12 = pneg %p2286_p10 }
 0xcba   : > { %2575 = dma.done.wait (%p2287_p12), %s1842_s13, 128  }
 0xcbb   : > { %2577 = vsyncadd (%p2287_p12), %s1842_s13, 4294967168  ;;  %s3050_s9 = sld [smem:[#allocation16_spill]]  ;;  %p21_p13 = scmp.ge.s32.totalorder %s2673_s10, 6  }
 0xcbc   : > { %s3051_s15 = smov %s2584_s16  ;;  %s3052_s16 = smov %s2588_s17 }
 0xcbd   : > { %s3054_s18 = smov %s2673_s10  ;;  %23 = sbr.rel (!%p21_p13) target bundleno = 11 (0xb), region = 102 }
 0xcc1   : > { %s3053_s17 = smov %s3050_s9 }
 0xcc2   :  { %1848 = vsyncpa [#allocation3], 1 }
 0xcc3   :  { %1850 = vsyncpa [#allocation3 + $0x1], 1 }
 0xcc4   :  { %1851 = vsyncpa [#allocation6], 1 }
 0xcc5   :  { %1853 = vsyncpa [#allocation6 + $0x1], 1 }
 0xcc6   :  { %1854 = vsyncpa [#allocation9], 1 }
 0xcc7   :  { %1855 = vsyncpa [#allocation4], 1 }
 0xcc8   :  { %1857 = vsyncpa [#allocation4 + $0x1], 1 }

</bundles_post_ra>
